<compile_context>
chip_gen: v7x
topology: tpu7x:2x2x1
jax: 0.10.0
libtpu: 0.0.40
codegen_flags: <defaults>
</compile_context>

<pallas_src>
import jax
import jax.numpy as jnp
from jax.experimental import pallas as pl
from jax.experimental.pallas import tpu as pltpu

# ----- small, module-consistent sizes -----
VOCAB   = 32     # vocab_size
MAX_LEN = 8      # max_len  -> T = MAX_LEN - 1 decode steps
HID     = 32     # dim_hidden (bidirectional=False)
WORD    = 16     # dim_word
B       = 2      # batch
S       = 8      # encoder seq len
T       = MAX_LEN - 1
G3      = 3 * HID
LANES   = 128

# slab row offsets (all multiples of 8)
_R_WH    = 0      # (32,128) [whh_r | whh_z | whh_n | aw1h]
_R_WCTX  = 32     # (32,128) [wihc_r | wihc_z | wihc_n | 0]
_R_WEMB  = 64     # (16,128) [wihw_r | wihw_z | wihw_n | 0]
_R_AW1E  = 80     # (32,128) [aw1e | 0]
_R_WOUT  = 112    # (32,128) [wout | 0]
_R_BIAS  = 144    # (8,128)  rows: ab1, bih_fused, bhh_n, bout, aw2, 0, 0, 0
SLAB_ROWS = 152


def decoder_kernel(emb_ref, enc_ref, h0_ref, slab_ref, logp_ref):
    # ---- static slab slices (8-aligned sublane offsets -> cheap views/loads) ----
    W_h    = slab_ref[_R_WH:_R_WH + HID, :]                 # (32, 128)
    W_ctx  = slab_ref[_R_WCTX:_R_WCTX + HID, :]             # (32, 128)
    W_emb  = slab_ref[_R_WEMB:_R_WEMB + WORD, :]            # (16, 128)
    aw1e   = slab_ref[_R_AW1E:_R_AW1E + HID, 0:HID]         # (32, 32)
    wout   = slab_ref[_R_WOUT:_R_WOUT + HID, 0:VOCAB]       # (32, 32)
    biases = slab_ref[_R_BIAS:_R_BIAS + 8, :]               # (8, 128)
    ab1    = biases[0:1, 0:HID]                             # (1, 32)
    bih_f  = biases[1:2, :]                                 # (1, 128)
    bhh_n  = biases[2:3, 0:HID]                             # (1, 32)
    bout   = biases[3:4, 0:VOCAB]                           # (1, 32)
    aw2    = biases[4:5, 0:HID]                             # (1, 32)

    enc = enc_ref[...]                                      # (B, S, H)

    # ---------------- time-invariant hoists (off the serial path) ----------------
    # encoder side of the attention linear1 (computed once)
    enc2 = enc.reshape(B * S, HID)
    enc_pre = (jnp.dot(enc2, aw1e, preferred_element_type=jnp.float32)
               + ab1).reshape(B, S, HID)                    # (B, S, H)

    # word-embedding side of the GRU input gates for ALL timesteps at once,
    # with bih (+ folded bhh_r/bhh_z) already added
    giw = (jnp.dot(emb_ref[...], W_emb, preferred_element_type=jnp.float32)
           + bih_f).reshape(T, B, LANES)                    # (T, B, 128)

    h = h0_ref[...]                                         # (B, H)
    hs = []

    # ---------------- serial recurrence over T (static unrolled loop) ----------------
    for t in range(T):
        # single fused h matmul: [gh_r | gh_z | gh_n | h_term]
        hf = jnp.dot(h, W_h, preferred_element_type=jnp.float32)        # (B, 128)
        h_term = hf[:, 3 * HID:4 * HID]                                  # (B, 32)

        # ---- attention (S kept on sublanes throughout, keepdims layouts) ----
        pre = jnp.tanh(enc_pre + h_term[:, None, :])                     # (B, S, H)
        e = jnp.sum(pre * aw2, axis=-1, keepdims=True)                   # (B, S, 1)
        m = jnp.max(e, axis=1, keepdims=True)                            # (B, 1, 1)
        p = jnp.exp(e - m)                                               # (B, S, 1)
        denom = jnp.sum(p, axis=1, keepdims=True)                        # (B, 1, 1)
        alpha = p * pl.reciprocal(denom, approx=False)                   # (B, S, 1)
        ctx = jnp.sum(alpha * enc, axis=1)                               # (B, H)

        # single fused ctx matmul: [gi_r | gi_z | gi_n | 0] (+ embedding/bias part)
        g_in = giw[t] + jnp.dot(ctx, W_ctx, preferred_element_type=jnp.float32)  # (B, 128)

        # GRU cell (PyTorch gate order r, z, n); bhh_r/bhh_z already folded in
        rz = jax.nn.sigmoid(g_in[:, 0:2 * HID] + hf[:, 0:2 * HID])       # (B, 64)
        r = rz[:, 0:HID]
        z = rz[:, HID:2 * HID]
        n = jnp.tanh(g_in[:, 2 * HID:3 * HID] + r * (hf[:, 2 * HID:3 * HID] + bhh_n))
        h = (1.0 - z) * n + z * h                                        # (B, H)
        hs.append(h)

    # ---------------- hoisted output projection + log_softmax (one pass) ----------------
    hs_all = jnp.concatenate(hs, axis=0)                                 # (T*B, H)
    logits = jnp.dot(hs_all, wout, preferred_element_type=jnp.float32) + bout  # (T*B, V)
    logp_ref[...] = jax.nn.log_softmax(logits, axis=-1)


def _pad_row(v, width=LANES):
    v = v.reshape(-1).astype(jnp.float32)
    return jnp.pad(v, (0, width - v.shape[0])).reshape(1, width)


def prepare_kernel_params(params):
    """One-time weight preprocessing: pack every weight/bias into one (152,128) slab."""
    aw1 = params['attn_w1'].T                                  # (2H, H) [in, out]
    aw1e = aw1[:HID]                                           # (H, H) encoder slice
    aw1h = aw1[HID:]                                           # (H, H) hidden slice

    # PyTorch [out,in] -> per-gate [in,out]
    wih = jnp.transpose(params['gru_w_ih'].reshape(3, HID, WORD + HID), (0, 2, 1))  # (3, W+H, H)
    whh = jnp.transpose(params['gru_w_hh'].reshape(3, HID, HID), (0, 2, 1))          # (3, H, H)
    wihw = wih[:, :WORD, :]                                    # (3, WORD, H)
    wihc = wih[:, WORD:, :]                                    # (3, H, H)
    bih = params['gru_b_ih'].reshape(3, HID)
    bhh = params['gru_b_hh'].reshape(3, HID)

    zH = jnp.zeros((HID, HID), jnp.float32)
    zW = jnp.zeros((WORD, HID), jnp.float32)

    W_h   = jnp.concatenate([whh[0], whh[1], whh[2], aw1h], axis=1)       # (32, 128)
    W_ctx = jnp.concatenate([wihc[0], wihc[1], wihc[2], zH], axis=1)      # (32, 128)
    W_emb = jnp.concatenate([wihw[0], wihw[1], wihw[2], zW], axis=1)      # (16, 128)
    aw1e_p = jnp.pad(aw1e, ((0, 0), (0, LANES - HID)))                    # (32, 128)
    wout_p = jnp.pad(params['out_w'].T, ((0, 0), (0, LANES - VOCAB)))     # (32, 128)

    # bhh_r / bhh_z fold into the input-gate bias; bhh_n stays separate (inside r*(...))
    bih_fused = jnp.concatenate(
        [bih[0] + bhh[0], bih[1] + bhh[1], bih[2], jnp.zeros((HID,), jnp.float32)]
    ).reshape(1, LANES)

    bias_rows = jnp.concatenate([
        _pad_row(params['attn_b1']),        # row 0: ab1
        bih_fused,                          # row 1: fused input-gate bias
        _pad_row(bhh[2]),                   # row 2: bhh_n
        _pad_row(params['out_b']),          # row 3: bout
        _pad_row(params['attn_w2']),        # row 4: aw2
        jnp.zeros((3, LANES), jnp.float32), # rows 5-7: padding
    ], axis=0)                                                            # (8, 128)

    slab = jnp.concatenate([W_h, W_ctx, W_emb, aw1e_p, wout_p, bias_rows], axis=0)
    assert slab.shape == (SLAB_ROWS, LANES)
    return dict(embedding=params['embedding'], slab=slab)


@jax.jit
def decoder_forward(kparams, encoder_outputs, encoder_hidden, targets):
    """Train-mode forward. Returns (seq_logprobs [B, T, V], seq_preds=None)."""
    # plain-JAX glue: embedding gather + time-major flatten
    targets_emb = kparams['embedding'][targets]                           # (B, MAX_LEN, WORD)
    emb_flat = jnp.transpose(targets_emb[:, :T, :], (1, 0, 2)).reshape(T * B, WORD)
    h0 = encoder_hidden[0]                                                # (B, HID)

    vmem = pl.BlockSpec(memory_space=pltpu.MemorySpace.VMEM)
    logp_flat = pl.pallas_call(
        decoder_kernel,
        out_shape=jax.ShapeDtypeStruct((T * B, VOCAB), jnp.float32),
        in_specs=[vmem, vmem, vmem, vmem],
        out_specs=vmem,
    )(emb_flat, encoder_outputs, h0, kparams['slab'])

    seq_logprobs = jnp.transpose(logp_flat.reshape(T, B, VOCAB), (1, 0, 2))   # (B, T, V)
    seq_preds = None   # train mode: seq_preds stays empty in the PyTorch module
    return seq_logprobs, seq_preds


# ---------------- pure-JAX reference (for correctness check) ----------------
def reference_forward(params, encoder_outputs, encoder_hidden, targets):
    emb = params['embedding'][targets]
    h = encoder_hidden[0]
    W1, b1 = params['attn_w1'], params['attn_b1']
    W2 = params['attn_w2']
    Wih, bih = params['gru_w_ih'], params['gru_b_ih']
    Whh, bhh = params['gru_w_hh'], params['gru_b_hh']
    Wo, bo = params['out_w'], params['out_b']
    outs = []
    for t in range(T):
        h_rep = jnp.broadcast_to(h[:, None, :], (B, S, HID))
        cat = jnp.concatenate([encoder_outputs, h_rep], axis=-1)
        pre = jnp.tanh(cat @ W1.T + b1)
        e = (pre @ W2.T)[..., 0]
        alpha = jax.nn.softmax(e, axis=-1)
        ctx = jnp.sum(alpha[:, :, None] * encoder_outputs, axis=1)
        x = jnp.concatenate([emb[:, t, :], ctx], axis=-1)
        gi = x @ Wih.T + bih
        gh = h @ Whh.T + bhh
        i_r, i_z, i_n = jnp.split(gi, 3, axis=1)
        h_r, h_z, h_n = jnp.split(gh, 3, axis=1)
        r = jax.nn.sigmoid(i_r + h_r)
        z = jax.nn.sigmoid(i_z + h_z)
        n = jnp.tanh(i_n + r * h_n)
        h = (1.0 - z) * n + z * h
        logits = h @ Wo.T + bo
        outs.append(jax.nn.log_softmax(logits, axis=-1))
    return jnp.stack(outs, axis=1)


def init_params(key):
    ks = jax.random.split(key, 8)
    xavier_out = (2.0 / (VOCAB + HID)) ** 0.5
    return {
        'embedding': 0.3 * jax.random.normal(ks[0], (VOCAB, WORD), jnp.float32),
        'attn_w1':   0.2 * jax.random.normal(ks[1], (HID, 2 * HID), jnp.float32),
        'attn_b1':   jnp.zeros((HID,), jnp.float32),
        'attn_w2':   0.2 * jax.random.normal(ks[2], (1, HID), jnp.float32),
        'gru_w_ih':  0.2 * jax.random.normal(ks[3], (G3, WORD + HID), jnp.float32),
        'gru_b_ih':  0.05 * jax.random.normal(ks[4], (G3,), jnp.float32),
        'gru_w_hh':  0.2 * jax.random.normal(ks[5], (G3, HID), jnp.float32),
        'gru_b_hh':  0.05 * jax.random.normal(ks[6], (G3,), jnp.float32),
        'out_w':     xavier_out * jax.random.normal(ks[7], (VOCAB, HID), jnp.float32),
        'out_b':     jnp.zeros((VOCAB,), jnp.float32),
    }


if __name__ == "__main__":
    key = jax.random.PRNGKey(0)
    kp, k1, k2, k3 = jax.random.split(key, 4)
    params = init_params(kp)

    encoder_outputs = jax.random.normal(k1, (B, S, HID), jnp.float32)
    encoder_hidden = jax.random.normal(k2, (1, B, HID), jnp.float32)
    targets = jax.random.randint(k3, (B, MAX_LEN), 0, VOCAB, dtype=jnp.int32)

    # one-time weight prep, hoisted out of the per-call path
    kparams = prepare_kernel_params(params)

    seq_logprobs, seq_preds = decoder_forward(kparams, encoder_outputs, encoder_hidden, targets)
    seq_logprobs = jax.block_until_ready(seq_logprobs)

    assert seq_logprobs.shape == (B, MAX_LEN - 1, VOCAB)
    assert bool(jnp.all(jnp.isfinite(seq_logprobs)))

    ref = reference_forward(params, encoder_outputs, encoder_hidden, targets)
    max_err = float(jnp.max(jnp.abs(seq_logprobs - ref)))
    assert max_err < 2e-3, f"mismatch vs reference: {max_err}"

    print("KERNEL_OK")
</pallas_src>

<mosaic_0001>
module attributes {stable_mosaic.version = 11 : i64} {
  func.func @decoder_kernel(%arg0: memref<14x16xf32, #tpu.memory_space<vmem>>, %arg1: memref<2x8x32xf32, #tpu.memory_space<vmem>>, %arg2: memref<2x32xf32, #tpu.memory_space<vmem>>, %arg3: memref<152x128xf32, #tpu.memory_space<vmem>>, %arg4: memref<14x32xf32, #tpu.memory_space<vmem>>) attributes {dimension_semantics = [], scalar_prefetch = 0 : i64, scratch_operands = 0 : i64, tpu.core_type = #tpu.core_type<tc>} {
    %c0 = arith.constant 0 : index
    %c0_0 = arith.constant 0 : index
    %0 = vector.load %arg3[%c0, %c0_0] : memref<152x128xf32, #tpu.memory_space<vmem>>, vector<32x128xf32>
    %c32 = arith.constant 32 : index
    %c0_1 = arith.constant 0 : index
    %1 = vector.load %arg3[%c32, %c0_1] : memref<152x128xf32, #tpu.memory_space<vmem>>, vector<32x128xf32>
    %c64 = arith.constant 64 : index
    %c0_2 = arith.constant 0 : index
    %2 = vector.load %arg3[%c64, %c0_2] : memref<152x128xf32, #tpu.memory_space<vmem>>, vector<16x128xf32>
    %c80 = arith.constant 80 : index
    %c0_3 = arith.constant 0 : index
    %3 = vector.load %arg3[%c80, %c0_3] : memref<152x128xf32, #tpu.memory_space<vmem>>, vector<32x32xf32>
    %c112 = arith.constant 112 : index
    %c0_4 = arith.constant 0 : index
    %4 = vector.load %arg3[%c112, %c0_4] : memref<152x128xf32, #tpu.memory_space<vmem>>, vector<32x32xf32>
    %c144 = arith.constant 144 : index
    %c0_5 = arith.constant 0 : index
    %5 = vector.load %arg3[%c144, %c0_5] : memref<152x128xf32, #tpu.memory_space<vmem>>, vector<8x128xf32>
    %6 = vector.extract_strided_slice %5 {offsets = [0, 0], sizes = [1, 32], strides = [1, 1]} : vector<8x128xf32> to vector<1x32xf32>
    %7 = vector.extract_strided_slice %5 {offsets = [1, 0], sizes = [1, 128], strides = [1, 1]} : vector<8x128xf32> to vector<1x128xf32>
    %8 = vector.extract_strided_slice %5 {offsets = [2, 0], sizes = [1, 32], strides = [1, 1]} : vector<8x128xf32> to vector<1x32xf32>
    %9 = vector.extract_strided_slice %5 {offsets = [3, 0], sizes = [1, 32], strides = [1, 1]} : vector<8x128xf32> to vector<1x32xf32>
    %10 = vector.extract_strided_slice %5 {offsets = [4, 0], sizes = [1, 32], strides = [1, 1]} : vector<8x128xf32> to vector<1x32xf32>
    %c0_6 = arith.constant 0 : index
    %c0_7 = arith.constant 0 : index
    %c0_8 = arith.constant 0 : index
    %11 = vector.load %arg1[%c0_6, %c0_7, %c0_8] : memref<2x8x32xf32, #tpu.memory_space<vmem>>, vector<2x8x32xf32>
    %12 = vector.shape_cast %11 : vector<2x8x32xf32> to vector<16x32xf32>
    %cst = arith.constant dense<0.000000e+00> : vector<16x32xf32>
    %13 = tpu.matmul %12, %3, %cst {dimension_numbers = #tpu.dot_dimension_numbers<[1], [0], [0], [1], [0, 0, 1, 1], [], []>} : vector<16x32xf32>, vector<32x32xf32>, vector<16x32xf32> -> vector<16x32xf32>
    %14 = vector.broadcast %6 : vector<1x32xf32> to vector<16x32xf32>
    %15 = arith.addf %13, %14 : vector<16x32xf32>
    %16 = vector.shape_cast %15 : vector<16x32xf32> to vector<2x8x32xf32>
    %c0_9 = arith.constant 0 : index
    %c0_10 = arith.constant 0 : index
    %17 = vector.load %arg0[%c0_9, %c0_10] : memref<14x16xf32, #tpu.memory_space<vmem>>, vector<14x16xf32>
    %cst_11 = arith.constant dense<0.000000e+00> : vector<14x128xf32>
    %18 = tpu.matmul %17, %2, %cst_11 {dimension_numbers = #tpu.dot_dimension_numbers<[1], [0], [0], [1], [0, 0, 1, 1], [], []>} : vector<14x16xf32>, vector<16x128xf32>, vector<14x128xf32> -> vector<14x128xf32>
    %19 = vector.broadcast %7 : vector<1x128xf32> to vector<14x128xf32>
    %20 = arith.addf %18, %19 : vector<14x128xf32>
    %21 = vector.shape_cast %20 : vector<14x128xf32> to vector<7x2x128xf32>
    %c0_12 = arith.constant 0 : index
    %c0_13 = arith.constant 0 : index
    %22 = vector.load %arg2[%c0_12, %c0_13] : memref<2x32xf32, #tpu.memory_space<vmem>>, vector<2x32xf32>
    %cst_14 = arith.constant dense<0.000000e+00> : vector<2x128xf32>
    %23 = tpu.matmul %22, %0, %cst_14 {dimension_numbers = #tpu.dot_dimension_numbers<[1], [0], [0], [1], [0, 0, 1, 1], [], []>} : vector<2x32xf32>, vector<32x128xf32>, vector<2x128xf32> -> vector<2x128xf32>
    %24 = vector.extract_strided_slice %23 {offsets = [0, 96], sizes = [2, 32], strides = [1, 1]} : vector<2x128xf32> to vector<2x32xf32>
    %25 = vector.shape_cast %24 : vector<2x32xf32> to vector<2x1x32xf32>
    %26 = vector.broadcast %25 : vector<2x1x32xf32> to vector<2x8x32xf32>
    %27 = arith.addf %16, %26 : vector<2x8x32xf32>
    %28 = math.tanh %27 : vector<2x8x32xf32>
    %29 = vector.shape_cast %10 : vector<1x32xf32> to vector<1x1x32xf32>
    %30 = vector.broadcast %29 : vector<1x1x32xf32> to vector<2x8x32xf32>
    %31 = arith.mulf %28, %30 : vector<2x8x32xf32>
    %cst_15 = arith.constant dense<0.000000e+00> : vector<2x8xf32>
    %32 = vector.multi_reduction <add>, %31, %cst_15 [2] : vector<2x8x32xf32> to vector<2x8xf32>
    %33 = vector.shape_cast %32 : vector<2x8xf32> to vector<2x8x1xf32>
    %cst_16 = arith.constant dense<0xFF800000> : vector<2x1xf32>
    %34 = vector.multi_reduction <maximumf>, %33, %cst_16 [1] : vector<2x8x1xf32> to vector<2x1xf32>
    %35 = vector.shape_cast %34 : vector<2x1xf32> to vector<2x1x1xf32>
    %36 = vector.broadcast %35 : vector<2x1x1xf32> to vector<2x8x1xf32>
    %37 = arith.subf %33, %36 : vector<2x8x1xf32>
    %38 = math.exp %37 : vector<2x8x1xf32>
    %cst_17 = arith.constant dense<0.000000e+00> : vector<2x1xf32>
    %39 = vector.multi_reduction <add>, %38, %cst_17 [1] : vector<2x8x1xf32> to vector<2x1xf32>
    %40 = vector.shape_cast %39 : vector<2x1xf32> to vector<2x1x1xf32>
    %41 = tpu.reciprocal %40 : vector<2x1x1xf32> -> vector<2x1x1xf32>
    %42 = vector.broadcast %41 : vector<2x1x1xf32> to vector<2x8x1xf32>
    %43 = arith.mulf %38, %42 : vector<2x8x1xf32>
    %44 = vector.broadcast %43 : vector<2x8x1xf32> to vector<2x8x32xf32>
    %45 = arith.mulf %44, %11 : vector<2x8x32xf32>
    %cst_18 = arith.constant dense<0.000000e+00> : vector<2x32xf32>
    %46 = vector.multi_reduction <add>, %45, %cst_18 [1] : vector<2x8x32xf32> to vector<2x32xf32>
    %47 = vector.extract_strided_slice %21 {offsets = [0, 0, 0], sizes = [1, 2, 128], strides = [1, 1, 1]} : vector<7x2x128xf32> to vector<1x2x128xf32>
    %48 = vector.shape_cast %47 : vector<1x2x128xf32> to vector<2x128xf32>
    %cst_19 = arith.constant dense<0.000000e+00> : vector<2x128xf32>
    %49 = tpu.matmul %46, %1, %cst_19 {dimension_numbers = #tpu.dot_dimension_numbers<[1], [0], [0], [1], [0, 0, 1, 1], [], []>} : vector<2x32xf32>, vector<32x128xf32>, vector<2x128xf32> -> vector<2x128xf32>
    %50 = arith.addf %48, %49 : vector<2x128xf32>
    %51 = vector.extract_strided_slice %50 {offsets = [0, 0], sizes = [2, 64], strides = [1, 1]} : vector<2x128xf32> to vector<2x64xf32>
    %52 = vector.extract_strided_slice %23 {offsets = [0, 0], sizes = [2, 64], strides = [1, 1]} : vector<2x128xf32> to vector<2x64xf32>
    %53 = arith.addf %51, %52 : vector<2x64xf32>
    %54 = arith.negf %53 : vector<2x64xf32>
    %55 = math.exp %54 : vector<2x64xf32>
    %cst_20 = arith.constant 1.000000e+00 : f32
    %56 = vector.broadcast %cst_20 : f32 to vector<2x64xf32>
    %57 = arith.addf %56, %55 : vector<2x64xf32>
    %58 = arith.divf %56, %57 : vector<2x64xf32>
    %59 = vector.extract_strided_slice %58 {offsets = [0, 0], sizes = [2, 32], strides = [1, 1]} : vector<2x64xf32> to vector<2x32xf32>
    %60 = vector.extract_strided_slice %58 {offsets = [0, 32], sizes = [2, 32], strides = [1, 1]} : vector<2x64xf32> to vector<2x32xf32>
    %61 = vector.extract_strided_slice %50 {offsets = [0, 64], sizes = [2, 32], strides = [1, 1]} : vector<2x128xf32> to vector<2x32xf32>
    %62 = vector.extract_strided_slice %23 {offsets = [0, 64], sizes = [2, 32], strides = [1, 1]} : vector<2x128xf32> to vector<2x32xf32>
    %63 = vector.broadcast %8 : vector<1x32xf32> to vector<2x32xf32>
    %64 = arith.addf %62, %63 : vector<2x32xf32>
    %65 = arith.mulf %59, %64 : vector<2x32xf32>
    %66 = arith.addf %61, %65 : vector<2x32xf32>
    %67 = math.tanh %66 : vector<2x32xf32>
    %cst_21 = arith.constant 1.000000e+00 : f32
    %68 = vector.broadcast %cst_21 : f32 to vector<2x32xf32>
    %69 = arith.subf %68, %60 : vector<2x32xf32>
    %70 = arith.mulf %69, %67 : vector<2x32xf32>
    %71 = arith.mulf %60, %22 : vector<2x32xf32>
    %72 = arith.addf %70, %71 : vector<2x32xf32>
    %cst_22 = arith.constant dense<0.000000e+00> : vector<2x128xf32>
    %73 = tpu.matmul %72, %0, %cst_22 {dimension_numbers = #tpu.dot_dimension_numbers<[1], [0], [0], [1], [0, 0, 1, 1], [], []>} : vector<2x32xf32>, vector<32x128xf32>, vector<2x128xf32> -> vector<2x128xf32>
    %74 = vector.extract_strided_slice %73 {offsets = [0, 96], sizes = [2, 32], strides = [1, 1]} : vector<2x128xf32> to vector<2x32xf32>
    %75 = vector.shape_cast %74 : vector<2x32xf32> to vector<2x1x32xf32>
    %76 = vector.broadcast %75 : vector<2x1x32xf32> to vector<2x8x32xf32>
    %77 = arith.addf %16, %76 : vector<2x8x32xf32>
    %78 = math.tanh %77 : vector<2x8x32xf32>
    %79 = vector.shape_cast %10 : vector<1x32xf32> to vector<1x1x32xf32>
    %80 = vector.broadcast %79 : vector<1x1x32xf32> to vector<2x8x32xf32>
    %81 = arith.mulf %78, %80 : vector<2x8x32xf32>
    %cst_23 = arith.constant dense<0.000000e+00> : vector<2x8xf32>
    %82 = vector.multi_reduction <add>, %81, %cst_23 [2] : vector<2x8x32xf32> to vector<2x8xf32>
    %83 = vector.shape_cast %82 : vector<2x8xf32> to vector<2x8x1xf32>
    %cst_24 = arith.constant dense<0xFF800000> : vector<2x1xf32>
    %84 = vector.multi_reduction <maximumf>, %83, %cst_24 [1] : vector<2x8x1xf32> to vector<2x1xf32>
    %85 = vector.shape_cast %84 : vector<2x1xf32> to vector<2x1x1xf32>
    %86 = vector.broadcast %85 : vector<2x1x1xf32> to vector<2x8x1xf32>
    %87 = arith.subf %83, %86 : vector<2x8x1xf32>
    %88 = math.exp %87 : vector<2x8x1xf32>
    %cst_25 = arith.constant dense<0.000000e+00> : vector<2x1xf32>
    %89 = vector.multi_reduction <add>, %88, %cst_25 [1] : vector<2x8x1xf32> to vector<2x1xf32>
    %90 = vector.shape_cast %89 : vector<2x1xf32> to vector<2x1x1xf32>
    %91 = tpu.reciprocal %90 : vector<2x1x1xf32> -> vector<2x1x1xf32>
    %92 = vector.broadcast %91 : vector<2x1x1xf32> to vector<2x8x1xf32>
    %93 = arith.mulf %88, %92 : vector<2x8x1xf32>
    %94 = vector.broadcast %93 : vector<2x8x1xf32> to vector<2x8x32xf32>
    %95 = arith.mulf %94, %11 : vector<2x8x32xf32>
    %cst_26 = arith.constant dense<0.000000e+00> : vector<2x32xf32>
    %96 = vector.multi_reduction <add>, %95, %cst_26 [1] : vector<2x8x32xf32> to vector<2x32xf32>
    %97 = vector.extract_strided_slice %21 {offsets = [1, 0, 0], sizes = [1, 2, 128], strides = [1, 1, 1]} : vector<7x2x128xf32> to vector<1x2x128xf32>
    %98 = vector.shape_cast %97 : vector<1x2x128xf32> to vector<2x128xf32>
    %cst_27 = arith.constant dense<0.000000e+00> : vector<2x128xf32>
    %99 = tpu.matmul %96, %1, %cst_27 {dimension_numbers = #tpu.dot_dimension_numbers<[1], [0], [0], [1], [0, 0, 1, 1], [], []>} : vector<2x32xf32>, vector<32x128xf32>, vector<2x128xf32> -> vector<2x128xf32>
    %100 = arith.addf %98, %99 : vector<2x128xf32>
    %101 = vector.extract_strided_slice %100 {offsets = [0, 0], sizes = [2, 64], strides = [1, 1]} : vector<2x128xf32> to vector<2x64xf32>
    %102 = vector.extract_strided_slice %73 {offsets = [0, 0], sizes = [2, 64], strides = [1, 1]} : vector<2x128xf32> to vector<2x64xf32>
    %103 = arith.addf %101, %102 : vector<2x64xf32>
    %104 = arith.negf %103 : vector<2x64xf32>
    %105 = math.exp %104 : vector<2x64xf32>
    %cst_28 = arith.constant 1.000000e+00 : f32
    %106 = vector.broadcast %cst_28 : f32 to vector<2x64xf32>
    %107 = arith.addf %106, %105 : vector<2x64xf32>
    %108 = arith.divf %106, %107 : vector<2x64xf32>
    %109 = vector.extract_strided_slice %108 {offsets = [0, 0], sizes = [2, 32], strides = [1, 1]} : vector<2x64xf32> to vector<2x32xf32>
    %110 = vector.extract_strided_slice %108 {offsets = [0, 32], sizes = [2, 32], strides = [1, 1]} : vector<2x64xf32> to vector<2x32xf32>
    %111 = vector.extract_strided_slice %100 {offsets = [0, 64], sizes = [2, 32], strides = [1, 1]} : vector<2x128xf32> to vector<2x32xf32>
    %112 = vector.extract_strided_slice %73 {offsets = [0, 64], sizes = [2, 32], strides = [1, 1]} : vector<2x128xf32> to vector<2x32xf32>
    %113 = vector.broadcast %8 : vector<1x32xf32> to vector<2x32xf32>
    %114 = arith.addf %112, %113 : vector<2x32xf32>
    %115 = arith.mulf %109, %114 : vector<2x32xf32>
    %116 = arith.addf %111, %115 : vector<2x32xf32>
    %117 = math.tanh %116 : vector<2x32xf32>
    %cst_29 = arith.constant 1.000000e+00 : f32
    %118 = vector.broadcast %cst_29 : f32 to vector<2x32xf32>
    %119 = arith.subf %118, %110 : vector<2x32xf32>
    %120 = arith.mulf %119, %117 : vector<2x32xf32>
    %121 = arith.mulf %110, %72 : vector<2x32xf32>
    %122 = arith.addf %120, %121 : vector<2x32xf32>
    %cst_30 = arith.constant dense<0.000000e+00> : vector<2x128xf32>
    %123 = tpu.matmul %122, %0, %cst_30 {dimension_numbers = #tpu.dot_dimension_numbers<[1], [0], [0], [1], [0, 0, 1, 1], [], []>} : vector<2x32xf32>, vector<32x128xf32>, vector<2x128xf32> -> vector<2x128xf32>
    %124 = vector.extract_strided_slice %123 {offsets = [0, 96], sizes = [2, 32], strides = [1, 1]} : vector<2x128xf32> to vector<2x32xf32>
    %125 = vector.shape_cast %124 : vector<2x32xf32> to vector<2x1x32xf32>
    %126 = vector.broadcast %125 : vector<2x1x32xf32> to vector<2x8x32xf32>
    %127 = arith.addf %16, %126 : vector<2x8x32xf32>
    %128 = math.tanh %127 : vector<2x8x32xf32>
    %129 = vector.shape_cast %10 : vector<1x32xf32> to vector<1x1x32xf32>
    %130 = vector.broadcast %129 : vector<1x1x32xf32> to vector<2x8x32xf32>
    %131 = arith.mulf %128, %130 : vector<2x8x32xf32>
    %cst_31 = arith.constant dense<0.000000e+00> : vector<2x8xf32>
    %132 = vector.multi_reduction <add>, %131, %cst_31 [2] : vector<2x8x32xf32> to vector<2x8xf32>
    %133 = vector.shape_cast %132 : vector<2x8xf32> to vector<2x8x1xf32>
    %cst_32 = arith.constant dense<0xFF800000> : vector<2x1xf32>
    %134 = vector.multi_reduction <maximumf>, %133, %cst_32 [1] : vector<2x8x1xf32> to vector<2x1xf32>
    %135 = vector.shape_cast %134 : vector<2x1xf32> to vector<2x1x1xf32>
    %136 = vector.broadcast %135 : vector<2x1x1xf32> to vector<2x8x1xf32>
    %137 = arith.subf %133, %136 : vector<2x8x1xf32>
    %138 = math.exp %137 : vector<2x8x1xf32>
    %cst_33 = arith.constant dense<0.000000e+00> : vector<2x1xf32>
    %139 = vector.multi_reduction <add>, %138, %cst_33 [1] : vector<2x8x1xf32> to vector<2x1xf32>
    %140 = vector.shape_cast %139 : vector<2x1xf32> to vector<2x1x1xf32>
    %141 = tpu.reciprocal %140 : vector<2x1x1xf32> -> vector<2x1x1xf32>
    %142 = vector.broadcast %141 : vector<2x1x1xf32> to vector<2x8x1xf32>
    %143 = arith.mulf %138, %142 : vector<2x8x1xf32>
    %144 = vector.broadcast %143 : vector<2x8x1xf32> to vector<2x8x32xf32>
    %145 = arith.mulf %144, %11 : vector<2x8x32xf32>
    %cst_34 = arith.constant dense<0.000000e+00> : vector<2x32xf32>
    %146 = vector.multi_reduction <add>, %145, %cst_34 [1] : vector<2x8x32xf32> to vector<2x32xf32>
    %147 = vector.extract_strided_slice %21 {offsets = [2, 0, 0], sizes = [1, 2, 128], strides = [1, 1, 1]} : vector<7x2x128xf32> to vector<1x2x128xf32>
    %148 = vector.shape_cast %147 : vector<1x2x128xf32> to vector<2x128xf32>
    %cst_35 = arith.constant dense<0.000000e+00> : vector<2x128xf32>
    %149 = tpu.matmul %146, %1, %cst_35 {dimension_numbers = #tpu.dot_dimension_numbers<[1], [0], [0], [1], [0, 0, 1, 1], [], []>} : vector<2x32xf32>, vector<32x128xf32>, vector<2x128xf32> -> vector<2x128xf32>
    %150 = arith.addf %148, %149 : vector<2x128xf32>
    %151 = vector.extract_strided_slice %150 {offsets = [0, 0], sizes = [2, 64], strides = [1, 1]} : vector<2x128xf32> to vector<2x64xf32>
    %152 = vector.extract_strided_slice %123 {offsets = [0, 0], sizes = [2, 64], strides = [1, 1]} : vector<2x128xf32> to vector<2x64xf32>
    %153 = arith.addf %151, %152 : vector<2x64xf32>
    %154 = arith.negf %153 : vector<2x64xf32>
    %155 = math.exp %154 : vector<2x64xf32>
    %cst_36 = arith.constant 1.000000e+00 : f32
    %156 = vector.broadcast %cst_36 : f32 to vector<2x64xf32>
    %157 = arith.addf %156, %155 : vector<2x64xf32>
    %158 = arith.divf %156, %157 : vector<2x64xf32>
    %159 = vector.extract_strided_slice %158 {offsets = [0, 0], sizes = [2, 32], strides = [1, 1]} : vector<2x64xf32> to vector<2x32xf32>
    %160 = vector.extract_strided_slice %158 {offsets = [0, 32], sizes = [2, 32], strides = [1, 1]} : vector<2x64xf32> to vector<2x32xf32>
    %161 = vector.extract_strided_slice %150 {offsets = [0, 64], sizes = [2, 32], strides = [1, 1]} : vector<2x128xf32> to vector<2x32xf32>
    %162 = vector.extract_strided_slice %123 {offsets = [0, 64], sizes = [2, 32], strides = [1, 1]} : vector<2x128xf32> to vector<2x32xf32>
    %163 = vector.broadcast %8 : vector<1x32xf32> to vector<2x32xf32>
    %164 = arith.addf %162, %163 : vector<2x32xf32>
    %165 = arith.mulf %159, %164 : vector<2x32xf32>
    %166 = arith.addf %161, %165 : vector<2x32xf32>
    %167 = math.tanh %166 : vector<2x32xf32>
    %cst_37 = arith.constant 1.000000e+00 : f32
    %168 = vector.broadcast %cst_37 : f32 to vector<2x32xf32>
    %169 = arith.subf %168, %160 : vector<2x32xf32>
    %170 = arith.mulf %169, %167 : vector<2x32xf32>
    %171 = arith.mulf %160, %122 : vector<2x32xf32>
    %172 = arith.addf %170, %171 : vector<2x32xf32>
    %cst_38 = arith.constant dense<0.000000e+00> : vector<2x128xf32>
    %173 = tpu.matmul %172, %0, %cst_38 {dimension_numbers = #tpu.dot_dimension_numbers<[1], [0], [0], [1], [0, 0, 1, 1], [], []>} : vector<2x32xf32>, vector<32x128xf32>, vector<2x128xf32> -> vector<2x128xf32>
    %174 = vector.extract_strided_slice %173 {offsets = [0, 96], sizes = [2, 32], strides = [1, 1]} : vector<2x128xf32> to vector<2x32xf32>
    %175 = vector.shape_cast %174 : vector<2x32xf32> to vector<2x1x32xf32>
    %176 = vector.broadcast %175 : vector<2x1x32xf32> to vector<2x8x32xf32>
    %177 = arith.addf %16, %176 : vector<2x8x32xf32>
    %178 = math.tanh %177 : vector<2x8x32xf32>
    %179 = vector.shape_cast %10 : vector<1x32xf32> to vector<1x1x32xf32>
    %180 = vector.broadcast %179 : vector<1x1x32xf32> to vector<2x8x32xf32>
    %181 = arith.mulf %178, %180 : vector<2x8x32xf32>
    %cst_39 = arith.constant dense<0.000000e+00> : vector<2x8xf32>
    %182 = vector.multi_reduction <add>, %181, %cst_39 [2] : vector<2x8x32xf32> to vector<2x8xf32>
    %183 = vector.shape_cast %182 : vector<2x8xf32> to vector<2x8x1xf32>
    %cst_40 = arith.constant dense<0xFF800000> : vector<2x1xf32>
    %184 = vector.multi_reduction <maximumf>, %183, %cst_40 [1] : vector<2x8x1xf32> to vector<2x1xf32>
    %185 = vector.shape_cast %184 : vector<2x1xf32> to vector<2x1x1xf32>
    %186 = vector.broadcast %185 : vector<2x1x1xf32> to vector<2x8x1xf32>
    %187 = arith.subf %183, %186 : vector<2x8x1xf32>
    %188 = math.exp %187 : vector<2x8x1xf32>
    %cst_41 = arith.constant dense<0.000000e+00> : vector<2x1xf32>
    %189 = vector.multi_reduction <add>, %188, %cst_41 [1] : vector<2x8x1xf32> to vector<2x1xf32>
    %190 = vector.shape_cast %189 : vector<2x1xf32> to vector<2x1x1xf32>
    %191 = tpu.reciprocal %190 : vector<2x1x1xf32> -> vector<2x1x1xf32>
    %192 = vector.broadcast %191 : vector<2x1x1xf32> to vector<2x8x1xf32>
    %193 = arith.mulf %188, %192 : vector<2x8x1xf32>
    %194 = vector.broadcast %193 : vector<2x8x1xf32> to vector<2x8x32xf32>
    %195 = arith.mulf %194, %11 : vector<2x8x32xf32>
    %cst_42 = arith.constant dense<0.000000e+00> : vector<2x32xf32>
    %196 = vector.multi_reduction <add>, %195, %cst_42 [1] : vector<2x8x32xf32> to vector<2x32xf32>
    %197 = vector.extract_strided_slice %21 {offsets = [3, 0, 0], sizes = [1, 2, 128], strides = [1, 1, 1]} : vector<7x2x128xf32> to vector<1x2x128xf32>
    %198 = vector.shape_cast %197 : vector<1x2x128xf32> to vector<2x128xf32>
    %cst_43 = arith.constant dense<0.000000e+00> : vector<2x128xf32>
    %199 = tpu.matmul %196, %1, %cst_43 {dimension_numbers = #tpu.dot_dimension_numbers<[1], [0], [0], [1], [0, 0, 1, 1], [], []>} : vector<2x32xf32>, vector<32x128xf32>, vector<2x128xf32> -> vector<2x128xf32>
    %200 = arith.addf %198, %199 : vector<2x128xf32>
    %201 = vector.extract_strided_slice %200 {offsets = [0, 0], sizes = [2, 64], strides = [1, 1]} : vector<2x128xf32> to vector<2x64xf32>
    %202 = vector.extract_strided_slice %173 {offsets = [0, 0], sizes = [2, 64], strides = [1, 1]} : vector<2x128xf32> to vector<2x64xf32>
    %203 = arith.addf %201, %202 : vector<2x64xf32>
    %204 = arith.negf %203 : vector<2x64xf32>
    %205 = math.exp %204 : vector<2x64xf32>
    %cst_44 = arith.constant 1.000000e+00 : f32
    %206 = vector.broadcast %cst_44 : f32 to vector<2x64xf32>
    %207 = arith.addf %206, %205 : vector<2x64xf32>
    %208 = arith.divf %206, %207 : vector<2x64xf32>
    %209 = vector.extract_strided_slice %208 {offsets = [0, 0], sizes = [2, 32], strides = [1, 1]} : vector<2x64xf32> to vector<2x32xf32>
    %210 = vector.extract_strided_slice %208 {offsets = [0, 32], sizes = [2, 32], strides = [1, 1]} : vector<2x64xf32> to vector<2x32xf32>
    %211 = vector.extract_strided_slice %200 {offsets = [0, 64], sizes = [2, 32], strides = [1, 1]} : vector<2x128xf32> to vector<2x32xf32>
    %212 = vector.extract_strided_slice %173 {offsets = [0, 64], sizes = [2, 32], strides = [1, 1]} : vector<2x128xf32> to vector<2x32xf32>
    %213 = vector.broadcast %8 : vector<1x32xf32> to vector<2x32xf32>
    %214 = arith.addf %212, %213 : vector<2x32xf32>
    %215 = arith.mulf %209, %214 : vector<2x32xf32>
    %216 = arith.addf %211, %215 : vector<2x32xf32>
    %217 = math.tanh %216 : vector<2x32xf32>
    %cst_45 = arith.constant 1.000000e+00 : f32
    %218 = vector.broadcast %cst_45 : f32 to vector<2x32xf32>
    %219 = arith.subf %218, %210 : vector<2x32xf32>
    %220 = arith.mulf %219, %217 : vector<2x32xf32>
    %221 = arith.mulf %210, %172 : vector<2x32xf32>
    %222 = arith.addf %220, %221 : vector<2x32xf32>
    %cst_46 = arith.constant dense<0.000000e+00> : vector<2x128xf32>
    %223 = tpu.matmul %222, %0, %cst_46 {dimension_numbers = #tpu.dot_dimension_numbers<[1], [0], [0], [1], [0, 0, 1, 1], [], []>} : vector<2x32xf32>, vector<32x128xf32>, vector<2x128xf32> -> vector<2x128xf32>
    %224 = vector.extract_strided_slice %223 {offsets = [0, 96], sizes = [2, 32], strides = [1, 1]} : vector<2x128xf32> to vector<2x32xf32>
    %225 = vector.shape_cast %224 : vector<2x32xf32> to vector<2x1x32xf32>
    %226 = vector.broadcast %225 : vector<2x1x32xf32> to vector<2x8x32xf32>
    %227 = arith.addf %16, %226 : vector<2x8x32xf32>
    %228 = math.tanh %227 : vector<2x8x32xf32>
    %229 = vector.shape_cast %10 : vector<1x32xf32> to vector<1x1x32xf32>
    %230 = vector.broadcast %229 : vector<1x1x32xf32> to vector<2x8x32xf32>
    %231 = arith.mulf %228, %230 : vector<2x8x32xf32>
    %cst_47 = arith.constant dense<0.000000e+00> : vector<2x8xf32>
    %232 = vector.multi_reduction <add>, %231, %cst_47 [2] : vector<2x8x32xf32> to vector<2x8xf32>
    %233 = vector.shape_cast %232 : vector<2x8xf32> to vector<2x8x1xf32>
    %cst_48 = arith.constant dense<0xFF800000> : vector<2x1xf32>
    %234 = vector.multi_reduction <maximumf>, %233, %cst_48 [1] : vector<2x8x1xf32> to vector<2x1xf32>
    %235 = vector.shape_cast %234 : vector<2x1xf32> to vector<2x1x1xf32>
    %236 = vector.broadcast %235 : vector<2x1x1xf32> to vector<2x8x1xf32>
    %237 = arith.subf %233, %236 : vector<2x8x1xf32>
    %238 = math.exp %237 : vector<2x8x1xf32>
    %cst_49 = arith.constant dense<0.000000e+00> : vector<2x1xf32>
    %239 = vector.multi_reduction <add>, %238, %cst_49 [1] : vector<2x8x1xf32> to vector<2x1xf32>
    %240 = vector.shape_cast %239 : vector<2x1xf32> to vector<2x1x1xf32>
    %241 = tpu.reciprocal %240 : vector<2x1x1xf32> -> vector<2x1x1xf32>
    %242 = vector.broadcast %241 : vector<2x1x1xf32> to vector<2x8x1xf32>
    %243 = arith.mulf %238, %242 : vector<2x8x1xf32>
    %244 = vector.broadcast %243 : vector<2x8x1xf32> to vector<2x8x32xf32>
    %245 = arith.mulf %244, %11 : vector<2x8x32xf32>
    %cst_50 = arith.constant dense<0.000000e+00> : vector<2x32xf32>
    %246 = vector.multi_reduction <add>, %245, %cst_50 [1] : vector<2x8x32xf32> to vector<2x32xf32>
    %247 = vector.extract_strided_slice %21 {offsets = [4, 0, 0], sizes = [1, 2, 128], strides = [1, 1, 1]} : vector<7x2x128xf32> to vector<1x2x128xf32>
    %248 = vector.shape_cast %247 : vector<1x2x128xf32> to vector<2x128xf32>
    %cst_51 = arith.constant dense<0.000000e+00> : vector<2x128xf32>
    %249 = tpu.matmul %246, %1, %cst_51 {dimension_numbers = #tpu.dot_dimension_numbers<[1], [0], [0], [1], [0, 0, 1, 1], [], []>} : vector<2x32xf32>, vector<32x128xf32>, vector<2x128xf32> -> vector<2x128xf32>
    %250 = arith.addf %248, %249 : vector<2x128xf32>
    %251 = vector.extract_strided_slice %250 {offsets = [0, 0], sizes = [2, 64], strides = [1, 1]} : vector<2x128xf32> to vector<2x64xf32>
    %252 = vector.extract_strided_slice %223 {offsets = [0, 0], sizes = [2, 64], strides = [1, 1]} : vector<2x128xf32> to vector<2x64xf32>
    %253 = arith.addf %251, %252 : vector<2x64xf32>
    %254 = arith.negf %253 : vector<2x64xf32>
    %255 = math.exp %254 : vector<2x64xf32>
    %cst_52 = arith.constant 1.000000e+00 : f32
    %256 = vector.broadcast %cst_52 : f32 to vector<2x64xf32>
    %257 = arith.addf %256, %255 : vector<2x64xf32>
    %258 = arith.divf %256, %257 : vector<2x64xf32>
    %259 = vector.extract_strided_slice %258 {offsets = [0, 0], sizes = [2, 32], strides = [1, 1]} : vector<2x64xf32> to vector<2x32xf32>
    %260 = vector.extract_strided_slice %258 {offsets = [0, 32], sizes = [2, 32], strides = [1, 1]} : vector<2x64xf32> to vector<2x32xf32>
    %261 = vector.extract_strided_slice %250 {offsets = [0, 64], sizes = [2, 32], strides = [1, 1]} : vector<2x128xf32> to vector<2x32xf32>
    %262 = vector.extract_strided_slice %223 {offsets = [0, 64], sizes = [2, 32], strides = [1, 1]} : vector<2x128xf32> to vector<2x32xf32>
    %263 = vector.broadcast %8 : vector<1x32xf32> to vector<2x32xf32>
    %264 = arith.addf %262, %263 : vector<2x32xf32>
    %265 = arith.mulf %259, %264 : vector<2x32xf32>
    %266 = arith.addf %261, %265 : vector<2x32xf32>
    %267 = math.tanh %266 : vector<2x32xf32>
    %cst_53 = arith.constant 1.000000e+00 : f32
    %268 = vector.broadcast %cst_53 : f32 to vector<2x32xf32>
    %269 = arith.subf %268, %260 : vector<2x32xf32>
    %270 = arith.mulf %269, %267 : vector<2x32xf32>
    %271 = arith.mulf %260, %222 : vector<2x32xf32>
    %272 = arith.addf %270, %271 : vector<2x32xf32>
    %cst_54 = arith.constant dense<0.000000e+00> : vector<2x128xf32>
    %273 = tpu.matmul %272, %0, %cst_54 {dimension_numbers = #tpu.dot_dimension_numbers<[1], [0], [0], [1], [0, 0, 1, 1], [], []>} : vector<2x32xf32>, vector<32x128xf32>, vector<2x128xf32> -> vector<2x128xf32>
    %274 = vector.extract_strided_slice %273 {offsets = [0, 96], sizes = [2, 32], strides = [1, 1]} : vector<2x128xf32> to vector<2x32xf32>
    %275 = vector.shape_cast %274 : vector<2x32xf32> to vector<2x1x32xf32>
    %276 = vector.broadcast %275 : vector<2x1x32xf32> to vector<2x8x32xf32>
    %277 = arith.addf %16, %276 : vector<2x8x32xf32>
    %278 = math.tanh %277 : vector<2x8x32xf32>
    %279 = vector.shape_cast %10 : vector<1x32xf32> to vector<1x1x32xf32>
    %280 = vector.broadcast %279 : vector<1x1x32xf32> to vector<2x8x32xf32>
    %281 = arith.mulf %278, %280 : vector<2x8x32xf32>
    %cst_55 = arith.constant dense<0.000000e+00> : vector<2x8xf32>
    %282 = vector.multi_reduction <add>, %281, %cst_55 [2] : vector<2x8x32xf32> to vector<2x8xf32>
    %283 = vector.shape_cast %282 : vector<2x8xf32> to vector<2x8x1xf32>
    %cst_56 = arith.constant dense<0xFF800000> : vector<2x1xf32>
    %284 = vector.multi_reduction <maximumf>, %283, %cst_56 [1] : vector<2x8x1xf32> to vector<2x1xf32>
    %285 = vector.shape_cast %284 : vector<2x1xf32> to vector<2x1x1xf32>
    %286 = vector.broadcast %285 : vector<2x1x1xf32> to vector<2x8x1xf32>
    %287 = arith.subf %283, %286 : vector<2x8x1xf32>
    %288 = math.exp %287 : vector<2x8x1xf32>
    %cst_57 = arith.constant dense<0.000000e+00> : vector<2x1xf32>
    %289 = vector.multi_reduction <add>, %288, %cst_57 [1] : vector<2x8x1xf32> to vector<2x1xf32>
    %290 = vector.shape_cast %289 : vector<2x1xf32> to vector<2x1x1xf32>
    %291 = tpu.reciprocal %290 : vector<2x1x1xf32> -> vector<2x1x1xf32>
    %292 = vector.broadcast %291 : vector<2x1x1xf32> to vector<2x8x1xf32>
    %293 = arith.mulf %288, %292 : vector<2x8x1xf32>
    %294 = vector.broadcast %293 : vector<2x8x1xf32> to vector<2x8x32xf32>
    %295 = arith.mulf %294, %11 : vector<2x8x32xf32>
    %cst_58 = arith.constant dense<0.000000e+00> : vector<2x32xf32>
    %296 = vector.multi_reduction <add>, %295, %cst_58 [1] : vector<2x8x32xf32> to vector<2x32xf32>
    %297 = vector.extract_strided_slice %21 {offsets = [5, 0, 0], sizes = [1, 2, 128], strides = [1, 1, 1]} : vector<7x2x128xf32> to vector<1x2x128xf32>
    %298 = vector.shape_cast %297 : vector<1x2x128xf32> to vector<2x128xf32>
    %cst_59 = arith.constant dense<0.000000e+00> : vector<2x128xf32>
    %299 = tpu.matmul %296, %1, %cst_59 {dimension_numbers = #tpu.dot_dimension_numbers<[1], [0], [0], [1], [0, 0, 1, 1], [], []>} : vector<2x32xf32>, vector<32x128xf32>, vector<2x128xf32> -> vector<2x128xf32>
    %300 = arith.addf %298, %299 : vector<2x128xf32>
    %301 = vector.extract_strided_slice %300 {offsets = [0, 0], sizes = [2, 64], strides = [1, 1]} : vector<2x128xf32> to vector<2x64xf32>
    %302 = vector.extract_strided_slice %273 {offsets = [0, 0], sizes = [2, 64], strides = [1, 1]} : vector<2x128xf32> to vector<2x64xf32>
    %303 = arith.addf %301, %302 : vector<2x64xf32>
    %304 = arith.negf %303 : vector<2x64xf32>
    %305 = math.exp %304 : vector<2x64xf32>
    %cst_60 = arith.constant 1.000000e+00 : f32
    %306 = vector.broadcast %cst_60 : f32 to vector<2x64xf32>
    %307 = arith.addf %306, %305 : vector<2x64xf32>
    %308 = arith.divf %306, %307 : vector<2x64xf32>
    %309 = vector.extract_strided_slice %308 {offsets = [0, 0], sizes = [2, 32], strides = [1, 1]} : vector<2x64xf32> to vector<2x32xf32>
    %310 = vector.extract_strided_slice %308 {offsets = [0, 32], sizes = [2, 32], strides = [1, 1]} : vector<2x64xf32> to vector<2x32xf32>
    %311 = vector.extract_strided_slice %300 {offsets = [0, 64], sizes = [2, 32], strides = [1, 1]} : vector<2x128xf32> to vector<2x32xf32>
    %312 = vector.extract_strided_slice %273 {offsets = [0, 64], sizes = [2, 32], strides = [1, 1]} : vector<2x128xf32> to vector<2x32xf32>
    %313 = vector.broadcast %8 : vector<1x32xf32> to vector<2x32xf32>
    %314 = arith.addf %312, %313 : vector<2x32xf32>
    %315 = arith.mulf %309, %314 : vector<2x32xf32>
    %316 = arith.addf %311, %315 : vector<2x32xf32>
    %317 = math.tanh %316 : vector<2x32xf32>
    %cst_61 = arith.constant 1.000000e+00 : f32
    %318 = vector.broadcast %cst_61 : f32 to vector<2x32xf32>
    %319 = arith.subf %318, %310 : vector<2x32xf32>
    %320 = arith.mulf %319, %317 : vector<2x32xf32>
    %321 = arith.mulf %310, %272 : vector<2x32xf32>
    %322 = arith.addf %320, %321 : vector<2x32xf32>
    %cst_62 = arith.constant dense<0.000000e+00> : vector<2x128xf32>
    %323 = tpu.matmul %322, %0, %cst_62 {dimension_numbers = #tpu.dot_dimension_numbers<[1], [0], [0], [1], [0, 0, 1, 1], [], []>} : vector<2x32xf32>, vector<32x128xf32>, vector<2x128xf32> -> vector<2x128xf32>
    %324 = vector.extract_strided_slice %323 {offsets = [0, 96], sizes = [2, 32], strides = [1, 1]} : vector<2x128xf32> to vector<2x32xf32>
    %325 = vector.shape_cast %324 : vector<2x32xf32> to vector<2x1x32xf32>
    %326 = vector.broadcast %325 : vector<2x1x32xf32> to vector<2x8x32xf32>
    %327 = arith.addf %16, %326 : vector<2x8x32xf32>
    %328 = math.tanh %327 : vector<2x8x32xf32>
    %329 = vector.shape_cast %10 : vector<1x32xf32> to vector<1x1x32xf32>
    %330 = vector.broadcast %329 : vector<1x1x32xf32> to vector<2x8x32xf32>
    %331 = arith.mulf %328, %330 : vector<2x8x32xf32>
    %cst_63 = arith.constant dense<0.000000e+00> : vector<2x8xf32>
    %332 = vector.multi_reduction <add>, %331, %cst_63 [2] : vector<2x8x32xf32> to vector<2x8xf32>
    %333 = vector.shape_cast %332 : vector<2x8xf32> to vector<2x8x1xf32>
    %cst_64 = arith.constant dense<0xFF800000> : vector<2x1xf32>
    %334 = vector.multi_reduction <maximumf>, %333, %cst_64 [1] : vector<2x8x1xf32> to vector<2x1xf32>
    %335 = vector.shape_cast %334 : vector<2x1xf32> to vector<2x1x1xf32>
    %336 = vector.broadcast %335 : vector<2x1x1xf32> to vector<2x8x1xf32>
    %337 = arith.subf %333, %336 : vector<2x8x1xf32>
    %338 = math.exp %337 : vector<2x8x1xf32>
    %cst_65 = arith.constant dense<0.000000e+00> : vector<2x1xf32>
    %339 = vector.multi_reduction <add>, %338, %cst_65 [1] : vector<2x8x1xf32> to vector<2x1xf32>
    %340 = vector.shape_cast %339 : vector<2x1xf32> to vector<2x1x1xf32>
    %341 = tpu.reciprocal %340 : vector<2x1x1xf32> -> vector<2x1x1xf32>
    %342 = vector.broadcast %341 : vector<2x1x1xf32> to vector<2x8x1xf32>
    %343 = arith.mulf %338, %342 : vector<2x8x1xf32>
    %344 = vector.broadcast %343 : vector<2x8x1xf32> to vector<2x8x32xf32>
    %345 = arith.mulf %344, %11 : vector<2x8x32xf32>
    %cst_66 = arith.constant dense<0.000000e+00> : vector<2x32xf32>
    %346 = vector.multi_reduction <add>, %345, %cst_66 [1] : vector<2x8x32xf32> to vector<2x32xf32>
    %347 = vector.extract_strided_slice %21 {offsets = [6, 0, 0], sizes = [1, 2, 128], strides = [1, 1, 1]} : vector<7x2x128xf32> to vector<1x2x128xf32>
    %348 = vector.shape_cast %347 : vector<1x2x128xf32> to vector<2x128xf32>
    %cst_67 = arith.constant dense<0.000000e+00> : vector<2x128xf32>
    %349 = tpu.matmul %346, %1, %cst_67 {dimension_numbers = #tpu.dot_dimension_numbers<[1], [0], [0], [1], [0, 0, 1, 1], [], []>} : vector<2x32xf32>, vector<32x128xf32>, vector<2x128xf32> -> vector<2x128xf32>
    %350 = arith.addf %348, %349 : vector<2x128xf32>
    %351 = vector.extract_strided_slice %350 {offsets = [0, 0], sizes = [2, 64], strides = [1, 1]} : vector<2x128xf32> to vector<2x64xf32>
    %352 = vector.extract_strided_slice %323 {offsets = [0, 0], sizes = [2, 64], strides = [1, 1]} : vector<2x128xf32> to vector<2x64xf32>
    %353 = arith.addf %351, %352 : vector<2x64xf32>
    %354 = arith.negf %353 : vector<2x64xf32>
    %355 = math.exp %354 : vector<2x64xf32>
    %cst_68 = arith.constant 1.000000e+00 : f32
    %356 = vector.broadcast %cst_68 : f32 to vector<2x64xf32>
    %357 = arith.addf %356, %355 : vector<2x64xf32>
    %358 = arith.divf %356, %357 : vector<2x64xf32>
    %359 = vector.extract_strided_slice %358 {offsets = [0, 0], sizes = [2, 32], strides = [1, 1]} : vector<2x64xf32> to vector<2x32xf32>
    %360 = vector.extract_strided_slice %358 {offsets = [0, 32], sizes = [2, 32], strides = [1, 1]} : vector<2x64xf32> to vector<2x32xf32>
    %361 = vector.extract_strided_slice %350 {offsets = [0, 64], sizes = [2, 32], strides = [1, 1]} : vector<2x128xf32> to vector<2x32xf32>
    %362 = vector.extract_strided_slice %323 {offsets = [0, 64], sizes = [2, 32], strides = [1, 1]} : vector<2x128xf32> to vector<2x32xf32>
    %363 = vector.broadcast %8 : vector<1x32xf32> to vector<2x32xf32>
    %364 = arith.addf %362, %363 : vector<2x32xf32>
    %365 = arith.mulf %359, %364 : vector<2x32xf32>
    %366 = arith.addf %361, %365 : vector<2x32xf32>
    %367 = math.tanh %366 : vector<2x32xf32>
    %cst_69 = arith.constant 1.000000e+00 : f32
    %368 = vector.broadcast %cst_69 : f32 to vector<2x32xf32>
    %369 = arith.subf %368, %360 : vector<2x32xf32>
    %370 = arith.mulf %369, %367 : vector<2x32xf32>
    %371 = arith.mulf %360, %322 : vector<2x32xf32>
    %372 = arith.addf %370, %371 : vector<2x32xf32>
    %373 = tpu.concatenate %72, %122, %172, %222, %272, %322, %372 in 0 : vector<2x32xf32>, vector<2x32xf32>, vector<2x32xf32>, vector<2x32xf32>, vector<2x32xf32>, vector<2x32xf32>, vector<2x32xf32> -> vector<14x32xf32>
    %cst_70 = arith.constant dense<0.000000e+00> : vector<14x32xf32>
    %374 = tpu.matmul %373, %4, %cst_70 {dimension_numbers = #tpu.dot_dimension_numbers<[1], [0], [0], [1], [0, 0, 1, 1], [], []>} : vector<14x32xf32>, vector<32x32xf32>, vector<14x32xf32> -> vector<14x32xf32>
    %375 = vector.broadcast %9 : vector<1x32xf32> to vector<14x32xf32>
    %376 = arith.addf %374, %375 : vector<14x32xf32>
    %cst_71 = arith.constant dense<0xFF800000> : vector<14xf32>
    %377 = vector.multi_reduction <maximumf>, %376, %cst_71 [1] : vector<14x32xf32> to vector<14xf32>
    %cst_72 = arith.constant 0xFF800000 : f32
    %378 = vector.broadcast %cst_72 : f32 to vector<14xf32>
    %379 = arith.maximumf %378, %377 : vector<14xf32>
    %380 = vector.shape_cast %379 : vector<14xf32> to vector<14x1xf32>
    %381 = vector.broadcast %380 : vector<14x1xf32> to vector<14x32xf32>
    %382 = arith.subf %376, %381 : vector<14x32xf32>
    %383 = math.exp %382 : vector<14x32xf32>
    %cst_73 = arith.constant dense<0.000000e+00> : vector<14xf32>
    %384 = vector.multi_reduction <add>, %383, %cst_73 [1] : vector<14x32xf32> to vector<14xf32>
    %385 = vector.shape_cast %384 : vector<14xf32> to vector<14x1xf32>
    %386 = math.log %385 : vector<14x1xf32>
    %387 = vector.broadcast %386 : vector<14x1xf32> to vector<14x32xf32>
    %388 = arith.subf %382, %387 : vector<14x32xf32>
    %c0_74 = arith.constant 0 : index
    %c0_75 = arith.constant 0 : index
    %389 = vector.load %arg4[%c0_74, %c0_75] : memref<14x32xf32, #tpu.memory_space<vmem>>, vector<14x32xf32>
    tpu.vector_store %arg4[%c0_74, %c0_75], %388 {strides = array<i32>} : memref<14x32xf32, #tpu.memory_space<vmem>>, vector<14x32xf32>,
    return
  }
}

</mosaic_0001>

<bundles_post_ra>
// kernel: decoder_forward.1
= control target key start
LH: loop header
LB: loop body
LE: loop exit
PB: predicated region body
PF: predicated region fallthrough
CT: control target
= control target key end

     0   :  { %vm130_vm0 = vcmask 130048   ;;  %vm42_vm1 = vcmask 261120   ;;  %v3019_v14 = vmov 0.0|0.0   ;;  %vm3020_vm2 = vmmov 0   ;;  %s3023_s19 = smov 32   ;;  %s3024_s20 = smov 64   ;;  %s3592_s3 = inlined_call_operand.vmem [shape: f32[152,128], index: 3, kind: input, shape index: {}]   ;;  %s3593_s0 = inlined_call_operand.vmem [shape: f32[14,16], index: 0, kind: input, shape index: {}]   ;;  %s3594_s1 = inlined_call_operand.vmem [shape: f32[2,8,32], index: 1, kind: input, shape index: {}]   ;;  %s3595_s2 = inlined_call_operand.vmem [shape: f32[2,32], index: 2, kind: input, shape index: {}]   ;;  %s3596_s4 = inlined_call_operand.vmem [shape: f32[14,32], index: 4, kind: output, shape index: {}]  }
   0x1   :  { %v25_v0 = vld [vmem:[%s3592_s3 + $0x40] sm:$0xff]  ;;  %v26_v1 = vld [vmem:[%s3592_s3 + $0x48] sm:$0xff]  ;;  %v27_v6 = vld [vmem:[%s3592_s3 + $0x50] sm:$0xff]  ;;  %v3021_v19 = vmov 0.0   ;;  %v38_v22 = vlaneseq  ;;  %v3022_v27 = vmov 1966171168  }
   0x2   :  { %v124_v2 = vld [vmem:[%s3593_s0] sm:$0xff]  ;;  %v2778_v3 = vpack.c.bf16 %v26_v1, %v25_v0  ;;  %v18_v5 = vld [vmem:[%s3592_s3 + $0x8] sm:$0xff]  ;;  %v28_v7 = vld [vmem:[%s3592_s3 + $0x58] sm:$0xff]  ;;  %v330_v28 = vunpack.c.l.s4 %v3022_v27  ;;  %v3025_v62 = vmov 1983009808   ;;  %vm433_vm3 = vcmask 1041409  }
   0x3   :  { %2602 = vmatprep.mubr.msk.f32.mxu1 %vm130_vm0, %v124_v2  ;;  %v17_v4 = vld [vmem:[%s3592_s3] sm:$0xff]  ;;  %v125_v9 = vld [vmem:[%s3593_s0 + $0x8] sm:$0x3f]  ;;  %v2770_v11 = vpack.c.bf16 %v28_v7, %v27_v6  ;;  %v19_v15 = vld [vmem:[%s3592_s3 + $0x10] sm:$0xff]  ;;  %v3131_v23 = vshrl.u32 %v38_v22, 7  ;;  %v216_v63 = vunpack.c.l.s4 %v3025_v62  ;;  %s3026_s29 = smov 96  }
   0x4   :  { %2779 = vmatprep.subr.bf16.mxu1 %v2778_v3  ;;  %v29_v8 = vld [vmem:[%s3592_s3 + $0x60] sm:$0xff]  ;;  %v3080_v10 = vpack.c.bf16 %v18_v5, %v17_v4  ;;  %v30_v12 = vld [vmem:[%s3592_s3 + $0x68] sm:$0xff]  ;;  %v20_v16 = vld [vmem:[%s3592_s3 + $0x18] sm:$0xff]  ;;  %v331_v31 = vunpack.c.0.s8 %v330_v28  ;;  %vm2346_vm4 = vcmask 1041408   ;;  %vm2348_vm5 = vcmask 1043456  }
   0x5   :  { %2781 = vmatpush3.bf16.msra.mxu1 %v2778_v3  ;;  %v3088_v13 = vld [vmem:[%s3594_s1] sm:$0xff]  ;;  %v2774_v17 = vpack.c.bf16 %v30_v12, %v29_v8  ;;  %2771 = vmatprep.subr.bf16.mxu0 %v2770_v11  ;;  %v3101_v18 = vpack.c.bf16 %v20_v16, %v19_v15  ;;  %v3109_v20 = vld [vmem:[%s3594_s1 + $0x8] sm:$0xff]  ;;  %v128_v24 = vsub.s32 1, %v3131_v23  ;;  %v35_v25 = vld [vmem:[%s3592_s3 + $0x90] sm:$0xff]  ;;  %v3150_v37 = vsub.s32 0, %v3131_v23 }
   0x6   :  { %2782 = vmatprep.subr.bf16.mxu1 %v3019_v14  ;;  %2595 = vmatprep.mubr.msk.f32.mxu0 %vm42_vm1, %v3088_v13  ;;  %v3115_v21 = vld [vmem:[%s3595_s2] sm:$0x3]  ;;  %v3145_v33 = vsub.s32 %v331_v31, %v3131_v23  ;;  %v517_v44 = vsub.s32 2, %v3131_v23  ;;  %v371_v54 = vsub.s32 4, %v3131_v23  ;;  %v217_v1 = vunpack.c.0.s8 %v216_v63  ;;  %v22_v6 = vld [vmem:[%s3592_s3 + $0x28] sm:$0xff]  ;;  %v23_v7 = vld [vmem:[%s3592_s3 + $0x30] sm:$0xff] }
   0x7   :  { %2773 = vmatpush3.bf16.msra.mxu0 %v2770_v11  ;;  %v3137_v26 = vrot.slane %v35_v25, %v128_v24  ;;  %v41_v47 = vrot.slane %v35_v25, %v3150_v37  ;;  %v21_v5 = vld [vmem:[%s3592_s3 + $0x20] sm:$0xff]  ;;  %vm2350_vm6 = vcmask 1045504   ;;  %vm2446_vm7 = vcmask 259072  }
   0x8   :  { %2603 = vmatmul.mubr.msk.f32.vlgmr.msra.gmra.mrb[0].mxu1 %vm130_vm0, %v125_v9  ;;  %2775 = vmatprep.subr.bf16.mxu0 %v2774_v17  ;;  %v518_v46 = vrot.slane %v35_v25, %v517_v44  ;;  %v3170_v55 = vrot.slane %v35_v25, %v371_v54  ;;  %v3181_v3 = vsub.s32 %v217_v1, %v3131_v23  ;;  %v24_v9 = vld [vmem:[%s3592_s3 + $0x38] sm:$0xff] }
   0x9   :  { %2784 = vmatpush3.bf16.msra.mxu1 %v3080_v10  ;;  %2613 = vmatprep.mubr.msk.f32.mxu1 %vm3020_vm2, %v3021_v19  ;;  %v3194_v8 = vpack.c.bf16 %v22_v6, %v21_v5  ;;  %v3200_v11 = vpack.c.bf16 %v24_v9, %v23_v7 }
   0xa   :  { %2785 = vmatprep.subr.bf16.mxu1 %v3019_v14 }
   0xb   :  { %2777 = vmatpush3.bf16.msra.mxu0 %v2774_v17 }
   0xc   :  { %2788 = vmatprep.subr.bf16.mxu0 %v3019_v14 }
   0xd   :  { %2787 = vmatpush3.bf16.msra.mxu1 %v3101_v18 }
   0xe   :  { %2794 = vmatprep.subr.bf16.mxu1 %v3019_v14  ;;  %2596 = vmatmul.mubr.msk.f32.vlgmr.msra.gmra.mrb[0].mxu0 %vm42_vm1, %v3109_v20 }
   0xf   :  { %2624 = vmatprep.mubr.msk.f32.mxu0 %vm3020_vm2, %v3021_v19  ;;  %2790 = vmatpush3.bf16.msra.mxu0 %v3194_v8 }
  0x10   :  { %2614 = vmatmul.mubr.msk.f32.vlgmr.msra.gmra.mrb[2].mxu1 %vm42_vm1, %v3115_v21  ;;  %2791 = vmatprep.subr.bf16.mxu0 %v3019_v14 }
  0x11   :  { %2796 = vmatpush3.bf16.msra.mxu1 %v3080_v10  ;;  %2635 = vmatprep.mubr.msk.f32.mxu1 %vm3020_vm2, %v3021_v19 }
  0x12   :  { %2797 = vmatprep.subr.bf16.mxu1 %v3019_v14 }
  0x13   :  { %2793 = vmatpush3.bf16.msra.mxu0 %v3200_v11 }
  0x14   :  { %2800 = vmatprep.subr.bf16.mxu0 %v3019_v14 }
  0x15   :  { %2799 = vmatpush3.bf16.msra.mxu1 %v3101_v18 }
  0x16   :  { %2806 = vmatprep.subr.bf16.mxu1 %v3019_v14 }
  0xdb   :  { %v2604_v29 = vpop.f32.mrb[0].mxu1 }
  0xdc   :  { %v3140_v30 = vadd.f32 %v2604_v29, %v3137_v26  ;;  %v3142_v32 = vpop.f32.mrb[1].mxu1 }
  0xe1   :  { %v2597_v34 = vpop.f32.mrb[0].mxu0 }
  0xe2   :  { %v115_v36 = vpop.f32.mrb[1].mxu0  ;;  %v3166_v51 = vadd.f32 %v2597_v34, %v41_v47 }
  0xe3   :  { %v3147_v35 = vpop.f32.mrb[2].mxu1  ;;  %v3163_v48 = vadd.f32 %v115_v36, %v41_v47 }
  0xe4   :  { %v335_v38 = vrot.slane %v3147_v35, %v3145_v33  ;;  %v2615_v39 = vpop.f32.mrb[3].mxu1 }
  0xe6   :  { %v336_v40 = vcombine.high %v335_v38, %v335_v38  ;;  %v343_v41 = vrot.slane %v335_v38, %v3145_v33 }
  0xe8   :  { %v354_v42 = vrot.slane %v343_v41, %v3150_v37  ;;  %v350_v43 = vrot.slane %v336_v40, %v3145_v33 }
  0xea   :  { %359 = vrot.lane.b32.xlu0 %v354_v42, %s3023_s19  ;;  %v358_v45 = vrot.slane %v350_v43, %v3150_v37 }
  0xee   :  { %361 = vrot.lane.b32.xlu0 %v358_v45, %s3023_s19 }
  0xf2   :  { %520 = vrot.lane.b32.xlu0 %v518_v46, %s3024_s20 }
 0x15c   :  { %v360_v49 = vpop.permute.xlu0 %359 }
 0x15d   :  { %v365_v50 = vadd.f32 %v360_v49, %v3163_v48 }
 0x15f   :  { %2882 = vtanh.f32 %v365_v50 }
 0x160   :  { %v362_v52 = vpop.permute.xlu0 %361 }
 0x161   :  { %v366_v53 = vadd.f32 %v362_v52, %v3166_v51 }
 0x163   :  { %2884 = vtanh.f32 %v366_v53 }
 0x164   :  { %v3176_v0 = vpop.permute.xlu0 %520 }
 0x165   :  { %v523_v2 = vadd.f32 %v3176_v0, %v3147_v35 }
 0x167   :  { %v531_v4 = vrot.slane %v523_v2, %v3181_v3 }
 0x169   :  { %v2883_v56 = vpop.eup %2882 }
 0x16a   :  { %v373_v57 = vmul.f32 %v2883_v56, %v3170_v55 }
 0x16c   :  { %v375_v58 = vsel %vm42_vm1, %v373_v57, 0.0 }
 0x16d   :  { %v2885_v59 = vpop.eup %2884  ;;  %376 = vadd.xlane.f32.xlu1 %v375_v58 }
 0x16e   :  { %v374_v60 = vmul.f32 %v2885_v59, %v3170_v55 }
 0x170   :  { %v378_v61 = vsel %vm42_vm1, %v374_v60, 0.0 }
 0x171   :  { %379 = vadd.xlane.f32.xlu1 %v378_v61 }
 0x182   :  { %532 = vrot.lane.b32.xlu1 %v531_v4, %s3024_s20 }
 0x1fa   :  { %v377_v12 = vpop.xlane.xlu1 %376 }
 0x1fb   :  { %v381_v15 = vrot.slane %v377_v12, 4 }
 0x1fd   :  { %v382_v16 = vmax.f32 %v377_v12, %v381_v15 }
 0x1fe   :  { %v380_v17 = vpop.xlane.xlu1 %379 }
 0x1ff   :  { %v383_v22 = vrot.slane %v382_v16, 2  ;;  %v387_v24 = vrot.slane %v380_v17, 4 }
 0x201   :  { %v384_v25 = vmax.f32 %v382_v16, %v383_v22  ;;  %v388_v27 = vmax.f32 %v380_v17, %v387_v24 }
 0x203   :  { %v385_v28 = vrot.slane %v384_v25, 1  ;;  %v389_v29 = vrot.slane %v388_v27, 2 }
 0x205   :  { %v386_v31 = vmax.f32 %v384_v25, %v385_v28  ;;  %v390_v34 = vmax.f32 %v388_v27, %v389_v29 }
 0x207   :  { %v393_v36 = vsub.f32 %v377_v12, %v386_v31  ;;  %v391_v38 = vrot.slane %v390_v34, 1  ;;  %v3219_v31 = vadd.f32 %v3142_v32, %v3137_v26 }
 0x209   :  { %v395_v39 = vmul.f32 1.442695, %v393_v36  ;;  %v392_v40 = vmax.f32 %v390_v34, %v391_v38  ;;  %v3223_v34 = vrot.slane %v3219_v31, %v3181_v3 }
 0x20b   :  { %2886 = vpow2.f32 %v395_v39  ;;  %v394_v41 = vsub.f32 %v380_v17, %v392_v40 }
 0x20d   :  { %v397_v42 = vmul.f32 1.442695, %v394_v41 }
 0x20f   :  { %2888 = vpow2.f32 %v397_v42 }
 0x215   :  { %v2887_v43 = vpop.eup %2886 }
 0x216   :  { %v399_v44 = vrot.slane %v2887_v43, 4 }
 0x218   :  { %v400_v45 = vadd.f32 %v2887_v43, %v399_v44 }
 0x219   :  { %v2889_v46 = vpop.eup %2888 }
 0x21a   :  { %v401_v47 = vrot.slane %v400_v45, 2  ;;  %v405_v49 = vrot.slane %v2889_v46, 4 }
 0x21c   :  { %v402_v50 = vadd.f32 %v401_v47, %v400_v45  ;;  %v406_v52 = vadd.f32 %v2889_v46, %v405_v49  ;;  %v533_v45 = vpop.permute.xlu1 %532 }
 0x21e   :  { %v407_v53 = vrot.slane %v406_v52, 2  ;;  %v403_v54 = vrot.slane %v402_v50, 1 }
 0x220   :  { %v408_v56 = vadd.f32 %v407_v53, %v406_v52  ;;  %v404_v57 = vadd.f32 %v403_v54, %v402_v50 }
 0x222   :  { %v409_v58 = vrot.slane %v408_v56, 1  ;;  %2890 = vrcp.f32 %v404_v57 }
 0x224   :  { %v410_v59 = vadd.f32 %v409_v58, %v408_v56 }
 0x226   :  { %2892 = vrcp.f32 %v410_v59 }
 0x22c   :  { %v2891_v60 = vpop.eup %2890 }
 0x22d   :  { %v413_v61 = vmul.f32 %v2891_v60, %v2887_v43 }
 0x22f   :  { %v415_v62 = vmul.f32 %v413_v61, %v3088_v13 }
 0x230   :  { %v2893_v63 = vpop.eup %2892 }
 0x231   :  { %v414_v1 = vmul.f32 %v2893_v63, %v2889_v46  ;;  %v417_v2 = vsel %vm42_vm1, %v415_v62, 0.0 }
 0x232   :  { %v418_v4 = vrot.slane %v417_v2, 4 }
 0x233   :  { %v416_v5 = vmul.f32 %v414_v1, %v3109_v20 }
 0x234   :  { %v419_v6 = vadd.f32 %v418_v4, %v417_v2 }
 0x235   :  { %v424_v7 = vsel %vm42_vm1, %v416_v5, 0.0 }
 0x236   :  { %v420_v9 = vrot.slane %v419_v6, 2  ;;  %v425_v12 = vrot.slane %v424_v7, 4 }
 0x238   :  { %v421_v15 = vadd.f32 %v420_v9, %v419_v6  ;;  %v426_v16 = vadd.f32 %v425_v12, %v424_v7 }
 0x23a   :  { %v427_v17 = vrot.slane %v426_v16, 2  ;;  %v422_v22 = vrot.slane %v421_v15, 1 }
 0x23c   :  { %v428_v24 = vadd.f32 %v427_v17, %v426_v16  ;;  %v423_v27 = vadd.f32 %v422_v22, %v421_v15 }
 0x23e   :  { %v429_v25 = vrot.slane %v428_v24, 1 }
 0x240   :  { %v430_v28 = vadd.f32 %v429_v25, %v428_v24 }
 0x242   :  { %v434_v29 = vsel %vm433_vm3, %v430_v28, %v423_v27 }
 0x243   :  { %2625 = vmatmul.mubr.msk.f32.vlgmr.msra.gmra.mrb[2].mxu0 %vm42_vm1, %v434_v29 }
 0x244   :  { %2802 = vmatpush3.bf16.msra.mxu0 %v3194_v8  ;;  %2646 = vmatprep.mubr.msk.f32.mxu0 %vm3020_vm2, %v3021_v19 }
 0x245   :  { %2803 = vmatprep.subr.bf16.mxu0 %v3019_v14 }
 0x248   :  { %2805 = vmatpush3.bf16.msra.mxu0 %v3200_v11 }
 0x249   :  { %2812 = vmatprep.subr.bf16.mxu0 %v3019_v14 }
 0x316   :  { %v503_v36 = vpop.f32.mrb[2].mxu0 }
 0x317   :  { %v507_v38 = vadd.f32 %v503_v36, %v3223_v34  ;;  %v2626_v39 = vpop.f32.mrb[3].mxu0 }
 0x319   :  { %v508_v40 = vadd.f32 %v507_v38, %v3147_v35  ;;  %v554_v35 = vrot.slane %v3115_v21, %v3181_v3 }
 0x31b   :  { %v2480_v41 = vmul.f32 -1.442695, %v508_v40 }
 0x31d   :  { %2894 = vpow2.f32 %v2480_v41 }
 0x327   :  { %v2895_v42 = vpop.eup %2894 }
 0x328   :  { %v512_v43 = vadd.f32 1.0, %v2895_v42 }
 0x32a   :  { %2896 = vrcp.f32 %v512_v43 }
 0x334   :  { %v2897_v44 = vpop.eup %2896 }
 0x335   :  { %v535_v46 = vmul.f32 %v2897_v44, %v533_v45  ;;  %v542_v50 = vsub.f32 1.0, %v2897_v44 }
 0x337   :  { %537 = vrot.lane.b32.xlu0 %v535_v46, %s3024_s20 }
 0x3a9   :  { %v538_v26 = vpop.permute.xlu0 %537 }
 0x3aa   :  { %v540_v32 = vadd.f32 %v538_v26, %v507_v38 }
 0x3ac   :  { %2898 = vtanh.f32 %v540_v32 }
 0x3b6   :  { %v2899_v47 = vpop.eup %2898 }
 0x3b7   :  { %544 = vrot.lane.b32.xlu0 %v2899_v47, %s3026_s29 }
 0x3bb   :  { %555 = vrot.lane.b32.xlu0 %v554_v35, %s3023_s19 }
 0x429   :  { %v545_v49 = vpop.permute.xlu0 %544 }
 0x42a   :  { %v547_v53 = vmul.f32 %v545_v49, %v542_v50 }
 0x42d   :  { %v556_v52 = vpop.permute.xlu0 %555 }
 0x42e   :  { %v558_v54 = vmul.f32 %v2897_v44, %v556_v52 }
 0x430   :  { %v3232_v56 = vadd.f32 %v558_v54, %v547_v53 }
 0x432   :  { %v567_v57 = vrot.slane %v3232_v56, %v3181_v3 }
 0x434   :  { %568 = vrot.lane.b32.xlu0 %v567_v57, %s3026_s29 }
 0x4a6   :  { %v569_v58 = vpop.permute.xlu0 %568 }
 0x4a7   :  { %2636 = vmatmul.mubr.msk.f32.vlgmr.msra.gmra.mrb[4].mxu1 %vm42_vm1, %v569_v58 }
 0x4a8   :  { %2808 = vmatpush3.bf16.msra.mxu1 %v3080_v10  ;;  %2657 = vmatprep.mubr.msk.f32.mxu1 %vm3020_vm2, %v3021_v19 }
 0x4a9   :  { %2809 = vmatprep.subr.bf16.mxu1 %v3019_v14 }
 0x4ac   :  { %2811 = vmatpush3.bf16.msra.mxu1 %v3101_v18 }
 0x4ad   :  { %2818 = vmatprep.subr.bf16.mxu1 %v3019_v14 }
 0x57a   :  { %v3244_v21 = vpop.f32.mrb[4].mxu1 }
 0x57b   :  { %v649_v59 = vrot.slane %v3244_v21, %v3145_v33  ;;  %v2637_v60 = vpop.f32.mrb[5].mxu1  ;;  %v824_v24 = vadd.f32 %v3244_v21, %v3176_v0 }
 0x57d   :  { %v650_v61 = vcombine.high %v649_v59, %v649_v59  ;;  %v657_v62 = vrot.slane %v649_v59, %v3145_v33  ;;  %v832_v25 = vrot.slane %v824_v24, %v3181_v3 }
 0x57f   :  { %v668_v63 = vrot.slane %v657_v62, %v3150_v37  ;;  %v664_v1 = vrot.slane %v650_v61, %v3145_v33 }
 0x581   :  { %673 = vrot.lane.b32.xlu1 %v668_v63, %s3023_s19  ;;  %v672_v2 = vrot.slane %v664_v1, %v3150_v37 }
 0x583   :  { %675 = vrot.lane.b32.xlu0 %v672_v2, %s3023_s19 }
 0x5f3   :  { %v674_v4 = vpop.permute.xlu1 %673 }
 0x5f4   :  { %v679_v5 = vadd.f32 %v674_v4, %v3163_v48 }
 0x5f5   :  { %v676_v6 = vpop.permute.xlu0 %675 }
 0x5f6   :  { %2900 = vtanh.f32 %v679_v5  ;;  %v680_v7 = vadd.f32 %v676_v6, %v3166_v51 }
 0x5f8   :  { %2902 = vtanh.f32 %v680_v7 }
 0x600   :  { %v2901_v9 = vpop.eup %2900 }
 0x601   :  { %v683_v12 = vmul.f32 %v2901_v9, %v3170_v55 }
 0x602   :  { %v2903_v15 = vpop.eup %2902 }
 0x603   :  { %v685_v16 = vsel %vm42_vm1, %v683_v12, 0.0  ;;  %v684_v17 = vmul.f32 %v2903_v15, %v3170_v55 }
 0x604   :  { %686 = vadd.xlane.f32.xlu1 %v685_v16 }
 0x605   :  { %v688_v22 = vsel %vm42_vm1, %v684_v17, 0.0 }
 0x606   :  { %689 = vadd.xlane.f32.xlu0 %v688_v22 }
 0x61c   :  { %833 = vrot.lane.b32.xlu0 %v832_v25, %s3024_s20 }
 0x691   :  { %v687_v27 = vpop.xlane.xlu1 %686 }
 0x692   :  { %v691_v28 = vrot.slane %v687_v27, 4 }
 0x693   :  { %v690_v29 = vpop.xlane.xlu0 %689 }
 0x694   :  { %v692_v36 = vmax.f32 %v687_v27, %v691_v28  ;;  %v697_v38 = vrot.slane %v690_v29, 4 }
 0x696   :  { %v693_v39 = vrot.slane %v692_v36, 2  ;;  %v698_v40 = vmax.f32 %v690_v29, %v697_v38 }
 0x698   :  { %v694_v41 = vmax.f32 %v692_v36, %v693_v39  ;;  %v699_v42 = vrot.slane %v698_v40, 2 }
 0x69a   :  { %v695_v43 = vrot.slane %v694_v41, 1  ;;  %v700_v44 = vmax.f32 %v698_v40, %v699_v42 }
 0x69c   :  { %v696_v45 = vmax.f32 %v694_v41, %v695_v43  ;;  %v701_v46 = vrot.slane %v700_v44, 1 }
 0x69e   :  { %v703_v26 = vsub.f32 %v687_v27, %v696_v45  ;;  %v702_v32 = vmax.f32 %v700_v44, %v701_v46  ;;  %v229_v44 = vcombine.high %v3223_v34, %v3223_v34 }
 0x6a0   :  { %v705_v47 = vmul.f32 1.442695, %v703_v26  ;;  %v704_v35 = vsub.f32 %v690_v29, %v702_v32 }
 0x6a2   :  { %2904 = vpow2.f32 %v705_v47  ;;  %v707_v49 = vmul.f32 1.442695, %v704_v35 }
 0x6a4   :  { %2906 = vpow2.f32 %v707_v49 }
 0x6ac   :  { %v2905_v50 = vpop.eup %2904 }
 0x6ad   :  { %v709_v52 = vrot.slane %v2905_v50, 4 }
 0x6ae   :  { %v2907_v53 = vpop.eup %2906 }
 0x6af   :  { %v710_v54 = vadd.f32 %v2905_v50, %v709_v52  ;;  %v715_v57 = vrot.slane %v2907_v53, 4  ;;  %v834_v52 = vpop.permute.xlu0 %833 }
 0x6b1   :  { %v711_v58 = vrot.slane %v710_v54, 2  ;;  %v716_v59 = vadd.f32 %v2907_v53, %v715_v57 }
 0x6b3   :  { %v712_v60 = vadd.f32 %v711_v58, %v710_v54  ;;  %v717_v61 = vrot.slane %v716_v59, 2 }
 0x6b5   :  { %v718_v62 = vadd.f32 %v717_v61, %v716_v59  ;;  %v713_v63 = vrot.slane %v712_v60, 1 }
 0x6b7   :  { %v714_v1 = vadd.f32 %v713_v63, %v712_v60  ;;  %v719_v2 = vrot.slane %v718_v62, 1 }
 0x6b9   :  { %v720_v4 = vadd.f32 %v719_v2, %v718_v62  ;;  %2908 = vrcp.f32 %v714_v1 }
 0x6bb   :  { %2910 = vrcp.f32 %v720_v4 }
 0x6c3   :  { %v2909_v5 = vpop.eup %2908 }
 0x6c4   :  { %v723_v6 = vmul.f32 %v2909_v5, %v2905_v50 }
 0x6c5   :  { %v2911_v7 = vpop.eup %2910 }
 0x6c6   :  { %v724_v9 = vmul.f32 %v2911_v7, %v2907_v53  ;;  %v725_v12 = vmul.f32 %v723_v6, %v3088_v13 }
 0x6c8   :  { %v726_v15 = vmul.f32 %v724_v9, %v3109_v20  ;;  %v727_v16 = vsel %vm42_vm1, %v725_v12, 0.0 }
 0x6c9   :  { %v728_v17 = vrot.slane %v727_v16, 4 }
 0x6ca   :  { %v734_v22 = vsel %vm42_vm1, %v726_v15, 0.0 }
 0x6cb   :  { %v729_v24 = vadd.f32 %v728_v17, %v727_v16  ;;  %v735_v25 = vrot.slane %v734_v22, 4 }
 0x6cd   :  { %v730_v27 = vrot.slane %v729_v24, 2  ;;  %v736_v28 = vadd.f32 %v735_v25, %v734_v22 }
 0x6cf   :  { %v731_v29 = vadd.f32 %v730_v27, %v729_v24  ;;  %v737_v36 = vrot.slane %v736_v28, 2 }
 0x6d1   :  { %v732_v38 = vrot.slane %v731_v29, 1  ;;  %v738_v39 = vadd.f32 %v737_v36, %v736_v28 }
 0x6d3   :  { %v739_v40 = vrot.slane %v738_v39, 1  ;;  %v733_v41 = vadd.f32 %v732_v38, %v731_v29 }
 0x6d5   :  { %v740_v42 = vadd.f32 %v739_v40, %v738_v39 }
 0x6d7   :  { %v743_v43 = vsel %vm433_vm3, %v740_v42, %v733_v41 }
 0x6d8   :  { %2647 = vmatmul.mubr.msk.f32.vlgmr.msra.gmra.mrb[4].mxu0 %vm42_vm1, %v743_v43 }
 0x6d9   :  { %2814 = vmatpush3.bf16.msra.mxu0 %v3194_v8  ;;  %2668 = vmatprep.mubr.msk.f32.mxu0 %vm3020_vm2, %v3021_v19 }
 0x6da   :  { %2815 = vmatprep.subr.bf16.mxu0 %v3019_v14 }
 0x6dd   :  { %2817 = vmatpush3.bf16.msra.mxu0 %v3200_v11 }
 0x6de   :  { %2824 = vmatprep.subr.bf16.mxu0 %v3019_v14 }
 0x7ab   :  { %v812_v45 = vpop.f32.mrb[4].mxu0 }
 0x7ac   :  { %v816_v46 = vadd.f32 %v812_v45, %v229_v44  ;;  %v2648_v26 = vpop.f32.mrb[5].mxu0 }
 0x7ae   :  { %v817_v32 = vadd.f32 %v816_v46, %v3244_v21 }
 0x7b0   :  { %v2483_v47 = vmul.f32 -1.442695, %v817_v32 }
 0x7b2   :  { %2912 = vpow2.f32 %v2483_v47 }
 0x7bc   :  { %v2913_v35 = vpop.eup %2912 }
 0x7bd   :  { %v821_v49 = vadd.f32 1.0, %v2913_v35 }
 0x7bf   :  { %2914 = vrcp.f32 %v821_v49 }
 0x7c9   :  { %v2915_v50 = vpop.eup %2914 }
 0x7ca   :  { %v836_v53 = vmul.f32 %v2915_v50, %v834_v52  ;;  %v843_v34 = vsub.f32 1.0, %v2915_v50  ;;  %v849_v21 = vmul.f32 %v2915_v50, %v3232_v56 }
 0x7cc   :  { %838 = vrot.lane.b32.xlu1 %v836_v53, %s3024_s20 }
 0x83e   :  { %v839_v54 = vpop.permute.xlu1 %838 }
 0x83f   :  { %v841_v57 = vadd.f32 %v839_v54, %v816_v46 }
 0x841   :  { %2916 = vtanh.f32 %v841_v57 }
 0x84b   :  { %v2917_v58 = vpop.eup %2916 }
 0x84c   :  { %845 = vrot.lane.b32.xlu1 %v2917_v58, %s3026_s29 }
 0x8be   :  { %v846_v59 = vpop.permute.xlu1 %845 }
 0x8bf   :  { %v848_v60 = vmul.f32 %v846_v59, %v843_v34 }
 0x8c1   :  { %v3282_v61 = vadd.f32 %v849_v21, %v848_v60 }
 0x8c3   :  { %v858_v62 = vrot.slane %v3282_v61, %v3181_v3 }
 0x8c5   :  { %859 = vrot.lane.b32.xlu0 %v858_v62, %s3026_s29 }
 0x937   :  { %v860_v63 = vpop.permute.xlu0 %859 }
 0x938   :  { %2658 = vmatmul.mubr.msk.f32.vlgmr.msra.gmra.mrb[6].mxu1 %vm42_vm1, %v860_v63 }
 0x939   :  { %2820 = vmatpush3.bf16.msra.mxu1 %v3080_v10  ;;  %2679 = vmatprep.mubr.msk.f32.mxu1 %vm3020_vm2, %v3021_v19 }
 0x93a   :  { %2821 = vmatprep.subr.bf16.mxu1 %v3019_v14 }
 0x93d   :  { %2823 = vmatpush3.bf16.msra.mxu1 %v3101_v18 }
 0x93e   :  { %2830 = vmatprep.subr.bf16.mxu1 %v3019_v14 }
 0xa0b   :  { %v3294_v1 = vpop.f32.mrb[6].mxu1 }
 0xa0c   :  { %v940_v2 = vrot.slane %v3294_v1, %v3145_v33  ;;  %v2659_v4 = vpop.f32.mrb[7].mxu1  ;;  %v1115_v38 = vadd.f32 %v3294_v1, %v3176_v0 }
 0xa0e   :  { %v941_v5 = vcombine.high %v940_v2, %v940_v2  ;;  %v948_v6 = vrot.slane %v940_v2, %v3145_v33  ;;  %v1123_v39 = vrot.slane %v1115_v38, %v3181_v3 }
 0xa10   :  { %v959_v7 = vrot.slane %v948_v6, %v3150_v37  ;;  %v955_v9 = vrot.slane %v941_v5, %v3145_v33 }
 0xa12   :  { %964 = vrot.lane.b32.xlu1 %v959_v7, %s3023_s19  ;;  %v963_v12 = vrot.slane %v955_v9, %v3150_v37 }
 0xa14   :  { %966 = vrot.lane.b32.xlu0 %v963_v12, %s3023_s19 }
 0xa84   :  { %v965_v15 = vpop.permute.xlu1 %964 }
 0xa85   :  { %v970_v16 = vadd.f32 %v965_v15, %v3163_v48 }
 0xa86   :  { %v967_v17 = vpop.permute.xlu0 %966 }
 0xa87   :  { %2918 = vtanh.f32 %v970_v16  ;;  %v971_v22 = vadd.f32 %v967_v17, %v3166_v51 }
 0xa89   :  { %2920 = vtanh.f32 %v971_v22 }
 0xa91   :  { %v2919_v24 = vpop.eup %2918 }
 0xa92   :  { %v974_v25 = vmul.f32 %v2919_v24, %v3170_v55 }
 0xa93   :  { %v2921_v27 = vpop.eup %2920 }
 0xa94   :  { %v976_v28 = vsel %vm42_vm1, %v974_v25, 0.0  ;;  %v975_v29 = vmul.f32 %v2921_v27, %v3170_v55 }
 0xa95   :  { %977 = vadd.xlane.f32.xlu1 %v976_v28 }
 0xa96   :  { %v979_v36 = vsel %vm42_vm1, %v975_v29, 0.0 }
 0xa97   :  { %980 = vadd.xlane.f32.xlu0 %v979_v36 }
 0xaad   :  { %1124 = vrot.lane.b32.xlu0 %v1123_v39, %s3024_s20 }
 0xb22   :  { %v978_v40 = vpop.xlane.xlu1 %977 }
 0xb23   :  { %v982_v41 = vrot.slane %v978_v40, 4 }
 0xb24   :  { %v981_v42 = vpop.xlane.xlu0 %980 }
 0xb25   :  { %v983_v43 = vmax.f32 %v978_v40, %v982_v41  ;;  %v988_v44 = vrot.slane %v981_v42, 4 }
 0xb27   :  { %v984_v45 = vrot.slane %v983_v43, 2  ;;  %v989_v46 = vmax.f32 %v981_v42, %v988_v44 }
 0xb29   :  { %v985_v26 = vmax.f32 %v983_v43, %v984_v45  ;;  %v990_v32 = vrot.slane %v989_v46, 2 }
 0xb2b   :  { %v986_v47 = vrot.slane %v985_v26, 1  ;;  %v991_v35 = vmax.f32 %v989_v46, %v990_v32 }
 0xb2d   :  { %v987_v49 = vmax.f32 %v985_v26, %v986_v47  ;;  %v992_v50 = vrot.slane %v991_v35, 1  ;;  %v214_v47 = vcombine.high %v3219_v31, %v3219_v31 }
 0xb2f   :  { %v994_v52 = vsub.f32 %v978_v40, %v987_v49  ;;  %v993_v53 = vmax.f32 %v991_v35, %v992_v50  ;;  %v3329_v35 = vrot.slane %v214_v47, %v3181_v3 }
 0xb31   :  { %v996_v54 = vmul.f32 1.442695, %v994_v52  ;;  %v995_v57 = vsub.f32 %v981_v42, %v993_v53 }
 0xb33   :  { %2922 = vpow2.f32 %v996_v54  ;;  %v998_v58 = vmul.f32 1.442695, %v995_v57 }
 0xb35   :  { %2924 = vpow2.f32 %v998_v58 }
 0xb3d   :  { %v2923_v34 = vpop.eup %2922 }
 0xb3e   :  { %v1000_v59 = vrot.slane %v2923_v34, 4 }
 0xb3f   :  { %v2925_v21 = vpop.eup %2924 }
 0xb40   :  { %v1001_v60 = vadd.f32 %v2923_v34, %v1000_v59  ;;  %v1006_v62 = vrot.slane %v2925_v21, 4  ;;  %v1125_v59 = vpop.permute.xlu0 %1124 }
 0xb42   :  { %v1002_v63 = vrot.slane %v1001_v60, 2  ;;  %v1007_v2 = vadd.f32 %v2925_v21, %v1006_v62 }
 0xb44   :  { %v1003_v4 = vadd.f32 %v1002_v63, %v1001_v60  ;;  %v1008_v5 = vrot.slane %v1007_v2, 2 }
 0xb46   :  { %v1009_v6 = vadd.f32 %v1008_v5, %v1007_v2  ;;  %v1004_v7 = vrot.slane %v1003_v4, 1 }
 0xb48   :  { %v1005_v9 = vadd.f32 %v1004_v7, %v1003_v4  ;;  %v1010_v12 = vrot.slane %v1009_v6, 1 }
 0xb4a   :  { %v1011_v15 = vadd.f32 %v1010_v12, %v1009_v6  ;;  %2926 = vrcp.f32 %v1005_v9 }
 0xb4c   :  { %2928 = vrcp.f32 %v1011_v15 }
 0xb54   :  { %v2927_v16 = vpop.eup %2926 }
 0xb55   :  { %v1014_v17 = vmul.f32 %v2927_v16, %v2923_v34 }
 0xb56   :  { %v2929_v22 = vpop.eup %2928 }
 0xb57   :  { %v1015_v24 = vmul.f32 %v2929_v22, %v2925_v21  ;;  %v1016_v25 = vmul.f32 %v1014_v17, %v3088_v13 }
 0xb59   :  { %v1017_v27 = vmul.f32 %v1015_v24, %v3109_v20  ;;  %v1018_v28 = vsel %vm42_vm1, %v1016_v25, 0.0 }
 0xb5a   :  { %v1019_v29 = vrot.slane %v1018_v28, 4 }
 0xb5b   :  { %v1025_v36 = vsel %vm42_vm1, %v1017_v27, 0.0 }
 0xb5c   :  { %v1020_v38 = vadd.f32 %v1019_v29, %v1018_v28  ;;  %v1026_v39 = vrot.slane %v1025_v36, 4 }
 0xb5e   :  { %v1021_v40 = vrot.slane %v1020_v38, 2  ;;  %v1027_v41 = vadd.f32 %v1026_v39, %v1025_v36 }
 0xb60   :  { %v1022_v42 = vadd.f32 %v1021_v40, %v1020_v38  ;;  %v1028_v43 = vrot.slane %v1027_v41, 2 }
 0xb62   :  { %v1023_v44 = vrot.slane %v1022_v42, 1  ;;  %v1029_v45 = vadd.f32 %v1028_v43, %v1027_v41 }
 0xb64   :  { %v1030_v46 = vrot.slane %v1029_v45, 1  ;;  %v1024_v26 = vadd.f32 %v1023_v44, %v1022_v42 }
 0xb66   :  { %v1031_v32 = vadd.f32 %v1030_v46, %v1029_v45 }
 0xb68   :  { %v1034_v13 = vsel %vm433_vm3, %v1031_v32, %v1024_v26 }
 0xb69   :  { %2669 = vmatmul.mubr.msk.f32.vlgmr.msra.gmra.mrb[6].mxu0 %vm42_vm1, %v1034_v13 }
 0xb6a   :  { %2826 = vmatpush3.bf16.msra.mxu0 %v3194_v8  ;;  %2690 = vmatprep.mubr.msk.f32.mxu0 %vm3020_vm2, %v3021_v19 }
 0xb6b   :  { %2827 = vmatprep.subr.bf16.mxu0 %v3019_v14 }
 0xb6e   :  { %2829 = vmatpush3.bf16.msra.mxu0 %v3200_v11 }
 0xb6f   :  { %2836 = vmatprep.subr.bf16.mxu0 %v3019_v14 }
 0xc3c   :  { %v1103_v49 = vpop.f32.mrb[6].mxu0 }
 0xc3d   :  { %v1107_v50 = vadd.f32 %v1103_v49, %v3329_v35  ;;  %v2670_v52 = vpop.f32.mrb[7].mxu0 }
 0xc3f   :  { %v1108_v53 = vadd.f32 %v1107_v50, %v3294_v1 }
 0xc41   :  { %v2486_v54 = vmul.f32 -1.442695, %v1108_v53 }
 0xc43   :  { %2930 = vpow2.f32 %v2486_v54 }
 0xc4d   :  { %v2931_v57 = vpop.eup %2930 }
 0xc4e   :  { %v1112_v58 = vadd.f32 1.0, %v2931_v57 }
 0xc50   :  { %2932 = vrcp.f32 %v1112_v58 }
 0xc5a   :  { %v2933_v34 = vpop.eup %2932 }
 0xc5b   :  { %v1127_v21 = vmul.f32 %v2933_v34, %v1125_v59  ;;  %v1134_v63 = vsub.f32 1.0, %v2933_v34  ;;  %v1140_v1 = vmul.f32 %v2933_v34, %v3282_v61 }
 0xc5d   :  { %1129 = vrot.lane.b32.xlu1 %v1127_v21, %s3024_s20 }
 0xccf   :  { %v1130_v31 = vpop.permute.xlu1 %1129 }
 0xcd0   :  { %v1132_v60 = vadd.f32 %v1130_v31, %v1107_v50 }
 0xcd2   :  { %2934 = vtanh.f32 %v1132_v60 }
 0xcdc   :  { %v2935_v62 = vpop.eup %2934 }
 0xcdd   :  { %1136 = vrot.lane.b32.xlu1 %v2935_v62, %s3026_s29 }
 0xd4f   :  { %v1137_v2 = vpop.permute.xlu1 %1136 }
 0xd50   :  { %v1139_v4 = vmul.f32 %v1137_v2, %v1134_v63 }
 0xd52   :  { %v3336_v5 = vadd.f32 %v1140_v1, %v1139_v4 }
 0xd54   :  { %v3340_v6 = vrot.slane %v3336_v5, %v3181_v3 }
 0xd56   :  { %1150 = vrot.lane.b32.xlu0 %v3340_v6, %s3026_s29 }
 0xdc8   :  { %v1151_v7 = vpop.permute.xlu0 %1150 }
 0xdc9   :  { %2680 = vmatmul.mubr.msk.f32.vlgmr.msra.gmra.mrb[8].mxu1 %vm42_vm1, %v1151_v7 }
 0xdca   :  { %2832 = vmatpush3.bf16.msra.mxu1 %v3080_v10  ;;  %2701 = vmatprep.mubr.msk.f32.mxu1 %vm3020_vm2, %v3021_v19 }
 0xdcb   :  { %2833 = vmatprep.subr.bf16.mxu1 %v3019_v14 }
 0xdce   :  { %2835 = vmatpush3.bf16.msra.mxu1 %v3101_v18 }
 0xdcf   :  { %2842 = vmatprep.subr.bf16.mxu1 %v3019_v14 }
 0xe9c   :  { %v3351_v9 = vpop.f32.mrb[8].mxu1 }
 0xe9d   :  { %v1231_v12 = vrot.slane %v3351_v9, %v3145_v33  ;;  %v2681_v15 = vpop.f32.mrb[9].mxu1  ;;  %v1406_v44 = vadd.f32 %v3351_v9, %v3176_v0 }
 0xe9f   :  { %v1232_v16 = vcombine.high %v1231_v12, %v1231_v12  ;;  %v1239_v17 = vrot.slane %v1231_v12, %v3145_v33  ;;  %v1414_v45 = vrot.slane %v1406_v44, %v3181_v3 }
 0xea1   :  { %v1250_v22 = vrot.slane %v1239_v17, %v3150_v37  ;;  %v1246_v24 = vrot.slane %v1232_v16, %v3145_v33 }
 0xea3   :  { %1255 = vrot.lane.b32.xlu1 %v1250_v22, %s3023_s19  ;;  %v1254_v25 = vrot.slane %v1246_v24, %v3150_v37 }
 0xea5   :  { %1257 = vrot.lane.b32.xlu0 %v1254_v25, %s3023_s19 }
 0xf15   :  { %v1256_v27 = vpop.permute.xlu1 %1255 }
 0xf16   :  { %v1261_v28 = vadd.f32 %v1256_v27, %v3163_v48 }
 0xf17   :  { %v1258_v29 = vpop.permute.xlu0 %1257 }
 0xf18   :  { %2936 = vtanh.f32 %v1261_v28  ;;  %v1262_v36 = vadd.f32 %v1258_v29, %v3166_v51 }
 0xf1a   :  { %2938 = vtanh.f32 %v1262_v36 }
 0xf22   :  { %v2937_v38 = vpop.eup %2936 }
 0xf23   :  { %v1265_v39 = vmul.f32 %v2937_v38, %v3170_v55 }
 0xf24   :  { %v2939_v40 = vpop.eup %2938 }
 0xf25   :  { %v1267_v41 = vsel %vm42_vm1, %v1265_v39, 0.0  ;;  %v1266_v42 = vmul.f32 %v2939_v40, %v3170_v55  ;;  %v3374_v40 = vld [vmem:[%s3594_s1] sm:$0xff] }
 0xf26   :  { %1268 = vadd.xlane.f32.xlu1 %v1267_v41 }
 0xf27   :  { %v1270_v43 = vsel %vm42_vm1, %v1266_v42, 0.0 }
 0xf28   :  { %1271 = vadd.xlane.f32.xlu0 %v1270_v43 }
 0xf3e   :  { %1415 = vrot.lane.b32.xlu0 %v1414_v45, %s3024_s20 }
 0xfb3   :  { %v1269_v46 = vpop.xlane.xlu1 %1268 }
 0xfb4   :  { %v1273_v26 = vrot.slane %v1269_v46, 4 }
 0xfb5   :  { %v1272_v32 = vpop.xlane.xlu0 %1271 }
 0xfb6   :  { %v1274_v13 = vmax.f32 %v1269_v46, %v1273_v26  ;;  %v1279_v47 = vrot.slane %v1272_v32, 4 }
 0xfb8   :  { %v1275_v49 = vrot.slane %v1274_v13, 2  ;;  %v1280_v50 = vmax.f32 %v1272_v32, %v1279_v47 }
 0xfba   :  { %v1276_v52 = vmax.f32 %v1274_v13, %v1275_v49  ;;  %v1281_v53 = vrot.slane %v1280_v50, 2 }
 0xfbc   :  { %v1277_v54 = vrot.slane %v1276_v52, 1  ;;  %v1282_v57 = vmax.f32 %v1280_v50, %v1281_v53 }
 0xfbe   :  { %v1278_v58 = vmax.f32 %v1276_v52, %v1277_v54  ;;  %v1283_v34 = vrot.slane %v1282_v57, 1 }
 0xfc0   :  { %v1285_v59 = vsub.f32 %v1269_v46, %v1278_v58  ;;  %v1284_v21 = vmax.f32 %v1282_v57, %v1283_v34 }
 0xfc2   :  { %v1287_v31 = vmul.f32 1.442695, %v1285_v59  ;;  %v1286_v60 = vsub.f32 %v1272_v32, %v1284_v21 }
 0xfc4   :  { %2940 = vpow2.f32 %v1287_v31  ;;  %v1289_v62 = vmul.f32 1.442695, %v1286_v60 }
 0xfc6   :  { %2942 = vpow2.f32 %v1289_v62 }
 0xfce   :  { %v2941_v63 = vpop.eup %2940 }
 0xfcf   :  { %v1291_v2 = vrot.slane %v2941_v63, 4 }
 0xfd0   :  { %v2943_v1 = vpop.eup %2942 }
 0xfd1   :  { %v1292_v4 = vadd.f32 %v2941_v63, %v1291_v2  ;;  %v1297_v7 = vrot.slane %v2943_v1, 4 }
 0xfd3   :  { %v1293_v12 = vrot.slane %v1292_v4, 2  ;;  %v1298_v15 = vadd.f32 %v2943_v1, %v1297_v7 }
 0xfd5   :  { %v1294_v16 = vadd.f32 %v1293_v12, %v1292_v4  ;;  %v1299_v17 = vrot.slane %v1298_v15, 2 }
 0xfd7   :  { %v1300_v22 = vadd.f32 %v1299_v17, %v1298_v15  ;;  %v1295_v24 = vrot.slane %v1294_v16, 1 }
 0xfd9   :  { %v1296_v25 = vadd.f32 %v1295_v24, %v1294_v16  ;;  %v1301_v27 = vrot.slane %v1300_v22, 1 }
 0xfdb   :  { %v1302_v28 = vadd.f32 %v1301_v27, %v1300_v22  ;;  %2944 = vrcp.f32 %v1296_v25 }
 0xfdd   :  { %2946 = vrcp.f32 %v1302_v28 }
 0xfe5   :  { %v2945_v29 = vpop.eup %2944 }
 0xfe6   :  { %v1305_v36 = vmul.f32 %v2945_v29, %v2941_v63 }
 0xfe7   :  { %v2947_v38 = vpop.eup %2946 }
 0xfe8   :  { %v1306_v39 = vmul.f32 %v2947_v38, %v2943_v1  ;;  %v1307_v41 = vmul.f32 %v3374_v40, %v1305_v36  ;;  %v1416_v1 = vpop.permute.xlu0 %1415 }
 0xfea   :  { %v1308_v42 = vmul.f32 %v1306_v39, %v3109_v20  ;;  %v1309_v43 = vsel %vm42_vm1, %v1307_v41, 0.0  ;;  %v230_v20 = vcombine.high %v3329_v35, %v3329_v35 }
 0xfeb   :  { %v1310_v44 = vrot.slane %v1309_v43, 4 }
 0xfec   :  { %v1316_v45 = vsel %vm42_vm1, %v1308_v42, 0.0 }
 0xfed   :  { %v1311_v46 = vadd.f32 %v1310_v44, %v1309_v43  ;;  %v1317_v26 = vrot.slane %v1316_v45, 4 }
 0xfef   :  { %v1312_v32 = vrot.slane %v1311_v46, 2  ;;  %v1318_v13 = vadd.f32 %v1317_v26, %v1316_v45 }
 0xff1   :  { %v1313_v47 = vadd.f32 %v1312_v32, %v1311_v46  ;;  %v1319_v49 = vrot.slane %v1318_v13, 2 }
 0xff3   :  { %v1314_v50 = vrot.slane %v1313_v47, 1  ;;  %v1320_v52 = vadd.f32 %v1319_v49, %v1318_v13 }
 0xff5   :  { %v1321_v53 = vrot.slane %v1320_v52, 1  ;;  %v1315_v54 = vadd.f32 %v1314_v50, %v1313_v47 }
 0xff7   :  { %v1322_v57 = vadd.f32 %v1321_v53, %v1320_v52 }
 0xff9   :  { %v1325_v58 = vsel %vm433_vm3, %v1322_v57, %v1315_v54 }
 0xffa   :  { %2691 = vmatmul.mubr.msk.f32.vlgmr.msra.gmra.mrb[8].mxu0 %vm42_vm1, %v1325_v58 }
 0xffb   :  { %2838 = vmatpush3.bf16.msra.mxu0 %v3194_v8  ;;  %2712 = vmatprep.mubr.msk.f32.mxu0 %vm3020_vm2, %v3021_v19 }
 0xffc   :  { %2839 = vmatprep.subr.bf16.mxu0 %v3019_v14 }
 0xfff   :  { %2841 = vmatpush3.bf16.msra.mxu0 %v3200_v11 }
0x1000   :  { %2848 = vmatprep.subr.bf16.mxu0 %v3019_v14 }
0x10cd   :  { %v1394_v34 = vpop.f32.mrb[8].mxu0 }
0x10ce   :  { %v1398_v59 = vadd.f32 %v1394_v34, %v230_v20  ;;  %v2692_v21 = vpop.f32.mrb[9].mxu0 }
0x10d0   :  { %v1399_v31 = vadd.f32 %v1398_v59, %v3351_v9 }
0x10d2   :  { %v2489_v60 = vmul.f32 -1.442695, %v1399_v31 }
0x10d4   :  { %2948 = vpow2.f32 %v2489_v60 }
0x10de   :  { %v2949_v62 = vpop.eup %2948 }
0x10df   :  { %v1403_v63 = vadd.f32 1.0, %v2949_v62 }
0x10e1   :  { %2950 = vrcp.f32 %v1403_v63 }
0x10eb   :  { %v2951_v2 = vpop.eup %2950 }
0x10ec   :  { %v1418_v4 = vmul.f32 %v2951_v2, %v1416_v1  ;;  %v1425_v35 = vsub.f32 1.0, %v2951_v2  ;;  %v1431_v9 = vmul.f32 %v2951_v2, %v3336_v5 }
0x10ee   :  { %1420 = vrot.lane.b32.xlu1 %v1418_v4, %s3024_s20 }
0x1160   :  { %v1421_v7 = vpop.permute.xlu1 %1420 }
0x1161   :  { %v1423_v12 = vadd.f32 %v1421_v7, %v1398_v59 }
0x1163   :  { %2952 = vtanh.f32 %v1423_v12 }
0x116d   :  { %v2953_v15 = vpop.eup %2952 }
0x116e   :  { %1427 = vrot.lane.b32.xlu1 %v2953_v15, %s3026_s29 }
0x11e0   :  { %v1428_v16 = vpop.permute.xlu1 %1427 }
0x11e1   :  { %v1430_v17 = vmul.f32 %v1428_v16, %v1425_v35 }
0x11e3   :  { %v3394_v22 = vadd.f32 %v1431_v9, %v1430_v17 }
0x11e5   :  { %v1440_v24 = vrot.slane %v3394_v22, %v3181_v3 }
0x11e7   :  { %1441 = vrot.lane.b32.xlu0 %v1440_v24, %s3026_s29 }
0x1259   :  { %v1442_v25 = vpop.permute.xlu0 %1441 }
0x125a   :  { %2702 = vmatmul.mubr.msk.f32.vlgmr.msra.gmra.mrb[10].mxu1 %vm42_vm1, %v1442_v25 }
0x125b   :  { %2844 = vmatpush3.bf16.msra.mxu1 %v3080_v10  ;;  %2723 = vmatprep.mubr.msk.f32.mxu1 %vm3020_vm2, %v3021_v19 }
0x125c   :  { %2845 = vmatprep.subr.bf16.mxu1 %v3019_v14 }
0x125f   :  { %2847 = vmatpush3.bf16.msra.mxu1 %v3101_v18 }
0x1260   :  { %2854 = vmatprep.subr.bf16.mxu1 %v3019_v14 }
0x132d   :  { %v3406_v5 = vpop.f32.mrb[10].mxu1 }
0x132e   :  { %v1522_v27 = vrot.slane %v3406_v5, %v3145_v33  ;;  %v2703_v28 = vpop.f32.mrb[11].mxu1  ;;  %v1697_v50 = vadd.f32 %v3406_v5, %v3176_v0 }
0x1330   :  { %v1523_v29 = vcombine.high %v1522_v27, %v1522_v27  ;;  %v1530_v36 = vrot.slane %v1522_v27, %v3145_v33  ;;  %v1705_v52 = vrot.slane %v1697_v50, %v3181_v3 }
0x1332   :  { %v1541_v38 = vrot.slane %v1530_v36, %v3150_v37  ;;  %v1537_v39 = vrot.slane %v1523_v29, %v3145_v33 }
0x1334   :  { %1546 = vrot.lane.b32.xlu1 %v1541_v38, %s3023_s19  ;;  %v1545_v41 = vrot.slane %v1537_v39, %v3150_v37 }
0x1336   :  { %1548 = vrot.lane.b32.xlu0 %v1545_v41, %s3023_s19 }
0x13a6   :  { %v1547_v42 = vpop.permute.xlu1 %1546 }
0x13a7   :  { %v1552_v43 = vadd.f32 %v1547_v42, %v3163_v48 }
0x13a8   :  { %v1549_v44 = vpop.permute.xlu0 %1548 }
0x13a9   :  { %2954 = vtanh.f32 %v1552_v43  ;;  %v1553_v45 = vadd.f32 %v1549_v44, %v3166_v51 }
0x13ab   :  { %2956 = vtanh.f32 %v1553_v45 }
0x13b3   :  { %v2955_v46 = vpop.eup %2954 }
0x13b4   :  { %v1556_v26 = vmul.f32 %v2955_v46, %v3170_v55 }
0x13b5   :  { %v2957_v32 = vpop.eup %2956 }
0x13b6   :  { %v1558_v13 = vsel %vm42_vm1, %v1556_v26, 0.0  ;;  %v1557_v47 = vmul.f32 %v2957_v32, %v3170_v55  ;;  %v3430_v32 = vld [vmem:[%s3594_s1 + $0x8] sm:$0xff] }
0x13b7   :  { %1559 = vadd.xlane.f32.xlu1 %v1558_v13 }
0x13b8   :  { %v1561_v49 = vsel %vm42_vm1, %v1557_v47, 0.0 }
0x13b9   :  { %1562 = vadd.xlane.f32.xlu0 %v1561_v49 }
0x13cf   :  { %1706 = vrot.lane.b32.xlu0 %v1705_v52, %s3024_s20 }
0x1444   :  { %v1560_v53 = vpop.xlane.xlu1 %1559 }
0x1445   :  { %v1564_v54 = vrot.slane %v1560_v53, 4 }
0x1446   :  { %v1563_v57 = vpop.xlane.xlu0 %1562 }
0x1447   :  { %v1565_v58 = vmax.f32 %v1560_v53, %v1564_v54  ;;  %v1570_v20 = vrot.slane %v1563_v57, 4 }
0x1449   :  { %v1566_v34 = vrot.slane %v1565_v58, 2  ;;  %v1571_v59 = vmax.f32 %v1563_v57, %v1570_v20 }
0x144b   :  { %v1567_v21 = vmax.f32 %v1565_v58, %v1566_v34  ;;  %v1572_v31 = vrot.slane %v1571_v59, 2 }
0x144d   :  { %v1568_v60 = vrot.slane %v1567_v21, 1  ;;  %v1573_v62 = vmax.f32 %v1571_v59, %v1572_v31 }
0x144f   :  { %v1569_v63 = vmax.f32 %v1567_v21, %v1568_v60  ;;  %v1574_v2 = vrot.slane %v1573_v62, 1 }
0x1451   :  { %v1576_v1 = vsub.f32 %v1560_v53, %v1569_v63  ;;  %v1575_v4 = vmax.f32 %v1573_v62, %v1574_v2  ;;  %v3445_v63 = vrot.slane %v3140_v30, %v3181_v3 }
0x1453   :  { %v1578_v7 = vmul.f32 1.442695, %v1576_v1  ;;  %v1577_v12 = vsub.f32 %v1563_v57, %v1575_v4 }
0x1455   :  { %2958 = vpow2.f32 %v1578_v7  ;;  %v1580_v15 = vmul.f32 1.442695, %v1577_v12 }
0x1457   :  { %2960 = vpow2.f32 %v1580_v15 }
0x145f   :  { %v2959_v35 = vpop.eup %2958 }
0x1460   :  { %v1582_v16 = vrot.slane %v2959_v35, 4 }
0x1461   :  { %v2961_v9 = vpop.eup %2960 }
0x1462   :  { %v1583_v17 = vadd.f32 %v2959_v35, %v1582_v16  ;;  %v1588_v24 = vrot.slane %v2961_v9, 4 }
0x1464   :  { %v1584_v25 = vrot.slane %v1583_v17, 2  ;;  %v1589_v27 = vadd.f32 %v2961_v9, %v1588_v24 }
0x1466   :  { %v1585_v28 = vadd.f32 %v1584_v25, %v1583_v17  ;;  %v1590_v29 = vrot.slane %v1589_v27, 2 }
0x1468   :  { %v1591_v36 = vadd.f32 %v1590_v29, %v1589_v27  ;;  %v1586_v38 = vrot.slane %v1585_v28, 1 }
0x146a   :  { %v1587_v39 = vadd.f32 %v1586_v38, %v1585_v28  ;;  %v1592_v41 = vrot.slane %v1591_v36, 1 }
0x146c   :  { %v1593_v42 = vadd.f32 %v1592_v41, %v1591_v36  ;;  %2962 = vrcp.f32 %v1587_v39 }
0x146e   :  { %2964 = vrcp.f32 %v1593_v42 }
0x1476   :  { %v2963_v43 = vpop.eup %2962 }
0x1477   :  { %v1596_v44 = vmul.f32 %v2963_v43, %v2959_v35 }
0x1478   :  { %v2965_v45 = vpop.eup %2964 }
0x1479   :  { %v1597_v46 = vmul.f32 %v2965_v45, %v2961_v9  ;;  %v1598_v26 = vmul.f32 %v3374_v40, %v1596_v44  ;;  %v1707_v9 = vpop.permute.xlu0 %1706 }
0x147b   :  { %v1599_v13 = vmul.f32 %v3430_v32, %v1597_v46  ;;  %v1600_v47 = vsel %vm42_vm1, %v1598_v26, 0.0 }
0x147c   :  { %v1601_v49 = vrot.slane %v1600_v47, 4 }
0x147d   :  { %v1607_v50 = vsel %vm42_vm1, %v1599_v13, 0.0 }
0x147e   :  { %v1602_v52 = vadd.f32 %v1601_v49, %v1600_v47  ;;  %v1608_v53 = vrot.slane %v1607_v50, 4 }
0x1480   :  { %v1603_v54 = vrot.slane %v1602_v52, 2  ;;  %v1609_v57 = vadd.f32 %v1608_v53, %v1607_v50 }
0x1482   :  { %v1604_v58 = vadd.f32 %v1603_v54, %v1602_v52  ;;  %v1610_v20 = vrot.slane %v1609_v57, 2 }
0x1484   :  { %v1605_v34 = vrot.slane %v1604_v58, 1  ;;  %v1611_v59 = vadd.f32 %v1610_v20, %v1609_v57 }
0x1486   :  { %v1612_v21 = vrot.slane %v1611_v59, 1  ;;  %v1606_v31 = vadd.f32 %v1605_v34, %v1604_v58 }
0x1488   :  { %v1613_v60 = vadd.f32 %v1612_v21, %v1611_v59 }
0x148a   :  { %v1616_v62 = vsel %vm433_vm3, %v1613_v60, %v1606_v31 }
0x148b   :  { %2713 = vmatmul.mubr.msk.f32.vlgmr.msra.gmra.mrb[10].mxu0 %vm42_vm1, %v1616_v62 }
0x148c   :  { %2850 = vmatpush3.bf16.msra.mxu0 %v3194_v8  ;;  %2734 = vmatprep.mubr.msk.f32.mxu0 %vm3020_vm2, %v3021_v19 }
0x148d   :  { %2851 = vmatprep.subr.bf16.mxu0 %v3019_v14 }
0x1490   :  { %2853 = vmatpush3.bf16.msra.mxu0 %v3200_v11 }
0x1491   :  { %2860 = vmatprep.subr.bf16.mxu0 %v3019_v14 }
0x155e   :  { %v1685_v2 = vpop.f32.mrb[10].mxu0 }
0x155f   :  { %v1689_v1 = vadd.f32 %v1685_v2, %v3445_v63  ;;  %v2714_v4 = vpop.f32.mrb[11].mxu0 }
0x1561   :  { %v1690_v7 = vadd.f32 %v1689_v1, %v3406_v5 }
0x1563   :  { %v2492_v12 = vmul.f32 -1.442695, %v1690_v7 }
0x1565   :  { %2966 = vpow2.f32 %v2492_v12 }
0x156f   :  { %v2967_v15 = vpop.eup %2966 }
0x1570   :  { %v1694_v35 = vadd.f32 1.0, %v2967_v15 }
0x1572   :  { %2968 = vrcp.f32 %v1694_v35 }
0x157c   :  { %v2969_v16 = vpop.eup %2968 }
0x157d   :  { %v1709_v17 = vmul.f32 %v2969_v16, %v1707_v9  ;;  %v1716_v28 = vsub.f32 1.0, %v2969_v16  ;;  %v1722_v5 = vmul.f32 %v2969_v16, %v3394_v22 }
0x157f   :  { %1711 = vrot.lane.b32.xlu1 %v1709_v17, %s3024_s20 }
0x15f1   :  { %v1712_v24 = vpop.permute.xlu1 %1711 }
0x15f2   :  { %v1714_v25 = vadd.f32 %v1712_v24, %v1689_v1 }
0x15f4   :  { %2970 = vtanh.f32 %v1714_v25 }
0x15fe   :  { %v2971_v27 = vpop.eup %2970 }
0x15ff   :  { %1718 = vrot.lane.b32.xlu1 %v2971_v27, %s3026_s29 }
0x1671   :  { %v1719_v29 = vpop.permute.xlu1 %1718 }
0x1672   :  { %v1721_v36 = vmul.f32 %v1719_v29, %v1716_v28 }
0x1674   :  { %v3452_v38 = vadd.f32 %v1722_v5, %v1721_v36 }
0x1676   :  { %v1731_v39 = vrot.slane %v3452_v38, %v3181_v3 }
0x1678   :  { %1732 = vrot.lane.b32.xlu0 %v1731_v39, %s3026_s29 }
0x16ea   :  { %v1733_v41 = vpop.permute.xlu0 %1732 }
0x16eb   :  { %2724 = vmatmul.mubr.msk.f32.vlgmr.msra.gmra.mrb[12].mxu1 %vm42_vm1, %v1733_v41 }
0x16ec   :  { %2856 = vmatpush3.bf16.msra.mxu1 %v3080_v10  ;;  %2745 = vmatprep.mubr.msk.f32.mxu1 %vm3020_vm2, %v3021_v19 }
0x16ed   :  { %2857 = vmatprep.subr.bf16.mxu1 %v3019_v14 }
0x16f0   :  { %2859 = vmatpush3.bf16.msra.mxu1 %v3101_v18 }
0x17be   :  { %v3463_v42 = vpop.f32.mrb[12].mxu1 }
0x17bf   :  { %v1813_v43 = vrot.slane %v3463_v42, %v3145_v33  ;;  %v2725_v44 = vpop.f32.mrb[13].mxu1  ;;  %v1988_v34 = vadd.f32 %v3463_v42, %v3176_v0 }
0x17c1   :  { %v1814_v45 = vcombine.high %v1813_v43, %v1813_v43  ;;  %v1821_v46 = vrot.slane %v1813_v43, %v3145_v33  ;;  %v1996_v59 = vrot.slane %v1988_v34, %v3181_v3 }
0x17c3   :  { %v1832_v26 = vrot.slane %v1821_v46, %v3150_v37  ;;  %v1828_v10 = vrot.slane %v1814_v45, %v3145_v33 }
0x17c5   :  { %1837 = vrot.lane.b32.xlu1 %v1832_v26, %s3023_s19  ;;  %v1836_v13 = vrot.slane %v1828_v10, %v3150_v37 }
0x17c7   :  { %1839 = vrot.lane.b32.xlu0 %v1836_v13, %s3023_s19 }
0x1837   :  { %v1838_v18 = vpop.permute.xlu1 %1837 }
0x1838   :  { %v1843_v47 = vadd.f32 %v1838_v18, %v3163_v48 }
0x1839   :  { %v1840_v49 = vpop.permute.xlu0 %1839 }
0x183a   :  { %2972 = vtanh.f32 %v1843_v47  ;;  %v1844_v50 = vadd.f32 %v1840_v49, %v3166_v51 }
0x183c   :  { %2974 = vtanh.f32 %v1844_v50 }
0x1844   :  { %v2973_v52 = vpop.eup %2972 }
0x1845   :  { %v1847_v53 = vmul.f32 %v2973_v52, %v3170_v55 }
0x1846   :  { %v2975_v54 = vpop.eup %2974 }
0x1847   :  { %v1849_v57 = vsel %vm42_vm1, %v1847_v53, 0.0  ;;  %v1848_v58 = vmul.f32 %v2975_v54, %v3170_v55 }
0x1848   :  { %1850 = vadd.xlane.f32.xlu1 %v1849_v57 }
0x1849   :  { %v1852_v20 = vsel %vm42_vm1, %v1848_v58, 0.0 }
0x184a   :  { %1853 = vadd.xlane.f32.xlu0 %v1852_v20 }
0x1860   :  { %1997 = vrot.lane.b32.xlu0 %v1996_v59, %s3024_s20 }
0x18d5   :  { %v1851_v21 = vpop.xlane.xlu1 %1850 }
0x18d6   :  { %v1855_v31 = vrot.slane %v1851_v21, 4 }
0x18d7   :  { %v1854_v60 = vpop.xlane.xlu0 %1853 }
0x18d8   :  { %v1856_v62 = vmax.f32 %v1851_v21, %v1855_v31  ;;  %v1861_v2 = vrot.slane %v1854_v60, 4 }
0x18da   :  { %v1857_v1 = vrot.slane %v1856_v62, 2  ;;  %v1862_v4 = vmax.f32 %v1854_v60, %v1861_v2 }
0x18dc   :  { %v1858_v7 = vmax.f32 %v1856_v62, %v1857_v1  ;;  %v1863_v12 = vrot.slane %v1862_v4, 2 }
0x18de   :  { %v1859_v15 = vrot.slane %v1858_v7, 1  ;;  %v1864_v35 = vmax.f32 %v1862_v4, %v1863_v12 }
0x18e0   :  { %v1860_v16 = vmax.f32 %v1858_v7, %v1859_v15  ;;  %v1865_v9 = vrot.slane %v1864_v35, 1 }
0x18e2   :  { %v1867_v17 = vsub.f32 %v1851_v21, %v1860_v16  ;;  %v1866_v24 = vmax.f32 %v1864_v35, %v1865_v9  ;;  %v246_v16 = vcombine.high %v3445_v63, %v3445_v63 }
0x18e4   :  { %v1869_v25 = vmul.f32 1.442695, %v1867_v17  ;;  %v1868_v27 = vsub.f32 %v1854_v60, %v1866_v24 }
0x18e6   :  { %2976 = vpow2.f32 %v1869_v25  ;;  %v1871_v28 = vmul.f32 1.442695, %v1868_v27 }
0x18e8   :  { %2978 = vpow2.f32 %v1871_v28 }
0x18f0   :  { %v2977_v29 = vpop.eup %2976 }
0x18f1   :  { %v1873_v5 = vrot.slane %v2977_v29, 4 }
0x18f2   :  { %v2979_v36 = vpop.eup %2978 }
0x18f3   :  { %v1874_v39 = vadd.f32 %v2977_v29, %v1873_v5  ;;  %v1879_v41 = vrot.slane %v2979_v36, 4  ;;  %v1998_v5 = vpop.permute.xlu0 %1997 }
0x18f5   :  { %v1875_v43 = vrot.slane %v1874_v39, 2  ;;  %v1880_v44 = vadd.f32 %v2979_v36, %v1879_v41 }
0x18f7   :  { %v1876_v45 = vadd.f32 %v1875_v43, %v1874_v39  ;;  %v1881_v46 = vrot.slane %v1880_v44, 2 }
0x18f9   :  { %v1882_v26 = vadd.f32 %v1881_v46, %v1880_v44  ;;  %v1877_v10 = vrot.slane %v1876_v45, 1 }
0x18fb   :  { %v1878_v13 = vadd.f32 %v1877_v10, %v1876_v45  ;;  %v1883_v18 = vrot.slane %v1882_v26, 1 }
0x18fd   :  { %v1884_v47 = vadd.f32 %v1883_v18, %v1882_v26  ;;  %2980 = vrcp.f32 %v1878_v13 }
0x18ff   :  { %2982 = vrcp.f32 %v1884_v47 }
0x1907   :  { %v2981_v49 = vpop.eup %2980 }
0x1908   :  { %v1887_v50 = vmul.f32 %v2981_v49, %v2977_v29 }
0x1909   :  { %v2983_v52 = vpop.eup %2982 }
0x190a   :  { %v1888_v53 = vmul.f32 %v2983_v52, %v2979_v36  ;;  %v1889_v54 = vmul.f32 %v3374_v40, %v1887_v50 }
0x190c   :  { %v1890_v57 = vmul.f32 %v3430_v32, %v1888_v53  ;;  %v1891_v58 = vsel %vm42_vm1, %v1889_v54, 0.0 }
0x190d   :  { %v1892_v20 = vrot.slane %v1891_v58, 4 }
0x190e   :  { %v1898_v34 = vsel %vm42_vm1, %v1890_v57, 0.0 }
0x190f   :  { %v1893_v59 = vadd.f32 %v1892_v20, %v1891_v58  ;;  %v1899_v21 = vrot.slane %v1898_v34, 4 }
0x1911   :  { %v1894_v31 = vrot.slane %v1893_v59, 2  ;;  %v1900_v60 = vadd.f32 %v1899_v21, %v1898_v34  ;;  %v2306_v21 = vcombine.low %v3282_v61, %v3282_v61 }
0x1913   :  { %v1895_v62 = vadd.f32 %v1894_v31, %v1893_v59  ;;  %v1901_v2 = vrot.slane %v1900_v60, 2 }
0x1915   :  { %v1896_v1 = vrot.slane %v1895_v62, 1  ;;  %v1902_v4 = vadd.f32 %v1901_v2, %v1900_v60  ;;  %v2313_v60 = vrot.slane %v2306_v21, %v3181_v3 }
0x1917   :  { %v1903_v7 = vrot.slane %v1902_v4, 1  ;;  %v1897_v12 = vadd.f32 %v1896_v1, %v1895_v62  ;;  %v2347_v61 = vsel %vm2346_vm4, %v3232_v56, %v2313_v60 }
0x1919   :  { %v1904_v15 = vadd.f32 %v1903_v7, %v1902_v4 }
0x191b   :  { %v1907_v35 = vsel %vm433_vm3, %v1904_v15, %v1897_v12 }
0x191c   :  { %2735 = vmatmul.mubr.msk.f32.vlgmr.msra.gmra.mrb[12].mxu0 %vm42_vm1, %v1907_v35 }
0x191d   :  { %2862 = vmatpush3.bf16.msra.mxu0 %v3194_v8  ;;  %2756 = vmatprep.mubr.msk.f32.mxu0 %vm3020_vm2, %v3021_v19 }
0x191e   :  { %2863 = vmatprep.subr.bf16.mxu0 %v3019_v14 }
0x1921   :  { %2865 = vmatpush3.bf16.msra.mxu0 %v3200_v11 }
0x19ef   :  { %v1976_v9 = vpop.f32.mrb[12].mxu0 }
0x19f0   :  { %v1980_v17 = vadd.f32 %v1976_v9, %v246_v16  ;;  %v2736_v24 = vpop.f32.mrb[13].mxu0 }
0x19f2   :  { %v1981_v25 = vadd.f32 %v1980_v17, %v3463_v42 }
0x19f4   :  { %v2495_v27 = vmul.f32 -1.442695, %v1981_v25 }
0x19f6   :  { %2984 = vpow2.f32 %v2495_v27 }
0x1a00   :  { %v2985_v28 = vpop.eup %2984 }
0x1a01   :  { %v1985_v29 = vadd.f32 1.0, %v2985_v28 }
0x1a03   :  { %2986 = vrcp.f32 %v1985_v29 }
0x1a0d   :  { %v2987_v8 = vpop.eup %2986 }
0x1a0e   :  { %v2000_v19 = vmul.f32 %v2987_v8, %v1998_v5  ;;  %v2007_v63 = vsub.f32 1.0, %v2987_v8  ;;  %v2013_v42 = vmul.f32 %v2987_v8, %v3452_v38 }
0x1a10   :  { %2002 = vrot.lane.b32.xlu1 %v2000_v19, %s3024_s20 }
0x1a82   :  { %v2003_v14 = vpop.permute.xlu1 %2002 }
0x1a83   :  { %v2005_v11 = vadd.f32 %v2003_v14, %v1980_v17 }
0x1a85   :  { %2988 = vtanh.f32 %v2005_v11 }
0x1a8f   :  { %v2989_v36 = vpop.eup %2988 }
0x1a90   :  { %2009 = vrot.lane.b32.xlu1 %v2989_v36, %s3026_s29 }
0x1b02   :  { %v2010_v39 = vpop.permute.xlu1 %2009 }
0x1b03   :  { %v2012_v41 = vmul.f32 %v2010_v39, %v2007_v63 }
0x1b05   :  { %v3500_v43 = vadd.f32 %v2013_v42, %v2012_v41 }
0x1b07   :  { %v2022_v44 = vrot.slane %v3500_v43, %v3181_v3 }
0x1b09   :  { %2023 = vrot.lane.b32.xlu0 %v2022_v44, %s3026_s29 }
0x1b7b   :  { %v2024_v45 = vpop.permute.xlu0 %2023 }
0x1b7c   :  { %2746 = vmatmul.mubr.msk.f32.vlgmr.msra.gmra.mrb[14].mxu1 %vm42_vm1, %v2024_v45 }
0x1c4f   :  { %v3506_v46 = vpop.f32.mrb[14].mxu1 }
0x1c50   :  { %v2104_v26 = vrot.slane %v3506_v46, %v3145_v33  ;;  %v2747_v10 = vpop.f32.mrb[15].mxu1 }
0x1c52   :  { %v2105_v13 = vcombine.high %v2104_v26, %v2104_v26  ;;  %v2112_v18 = vrot.slane %v2104_v26, %v3145_v33 }
0x1c54   :  { %v2123_v47 = vrot.slane %v2112_v18, %v3150_v37  ;;  %v2119_v49 = vrot.slane %v2105_v13, %v3145_v33 }
0x1c56   :  { %2128 = vrot.lane.b32.xlu1 %v2123_v47, %s3023_s19  ;;  %v2127_v50 = vrot.slane %v2119_v49, %v3150_v37 }
0x1c58   :  { %2130 = vrot.lane.b32.xlu0 %v2127_v50, %s3023_s19 }
0x1cc8   :  { %v2129_v52 = vpop.permute.xlu1 %2128 }
0x1cc9   :  { %v2134_v53 = vadd.f32 %v2129_v52, %v3163_v48  ;;  %v2317_v48 = vcombine.low %v3394_v22, %v3394_v22 }
0x1cca   :  { %v2131_v54 = vpop.permute.xlu0 %2130 }
0x1ccb   :  { %2990 = vtanh.f32 %v2134_v53  ;;  %v2135_v57 = vadd.f32 %v2131_v54, %v3166_v51  ;;  %v2279_v51 = vadd.f32 %v3506_v46, %v3176_v0  ;;  %v2324_v31 = vrot.slane %v2317_v48, %v3181_v3 }
0x1ccd   :  { %2992 = vtanh.f32 %v2135_v57  ;;  %v2287_v62 = vrot.slane %v2279_v51, %v3181_v3  ;;  %v2325_v2 = vcombine.low %v2324_v31, %v2324_v31 }
0x1cd5   :  { %v2991_v58 = vpop.eup %2990 }
0x1cd6   :  { %v2138_v20 = vmul.f32 %v2991_v58, %v3170_v55 }
0x1cd7   :  { %v2993_v34 = vpop.eup %2992 }
0x1cd8   :  { %v2140_v33 = vsel %vm42_vm1, %v2138_v20, 0.0  ;;  %v2139_v59 = vmul.f32 %v2993_v34, %v3170_v55  ;;  %v2315_v55 = vcombine.low %v3340_v6, %v3340_v6 }
0x1cd9   :  { %2141 = vadd.xlane.f32.xlu1 %v2140_v33 }
0x1cda   :  { %v2143_v37 = vsel %vm42_vm1, %v2139_v59, 0.0  ;;  %v2349_v0 = vsel %vm2348_vm5, %v2347_v61, %v2315_v55 }
0x1cdb   :  { %2144 = vadd.xlane.f32.xlu0 %v2143_v37  ;;  %v2351_v22 = vsel %vm2350_vm6, %v2349_v0, %v2325_v2 }
0x1cf1   :  { %2288 = vrot.lane.b32.xlu0 %v2287_v62, %s3024_s20 }
0x1cf5   :  { %2360 = vrot.lane.b32.xlu0 %v2351_v22, %s3026_s29 }
0x1d66   :  { %v2142_v1 = vpop.xlane.xlu1 %2141 }
0x1d67   :  { %v2146_v4 = vrot.slane %v2142_v1, 4 }
0x1d68   :  { %v2145_v7 = vpop.xlane.xlu0 %2144 }
0x1d69   :  { %v2147_v6 = vmax.f32 %v2142_v1, %v2146_v4  ;;  %v2152_v12 = vrot.slane %v2145_v7, 4 }
0x1d6b   :  { %v2148_v15 = vrot.slane %v2147_v6, 2  ;;  %v2153_v35 = vmax.f32 %v2145_v7, %v2152_v12 }
0x1d6c   :  { %v3538_v16 = vpop.permute.xlu0 %2288 }
0x1d6d   :  { %v2149_v9 = vmax.f32 %v2147_v6, %v2148_v15  ;;  %v2154_v17 = vrot.slane %v2153_v35, 2 }
0x1d6f   :  { %v2150_v24 = vrot.slane %v2149_v9, 1  ;;  %v2155_v25 = vmax.f32 %v2153_v35, %v2154_v17 }
0x1d70   :  { %v2361_v27 = vpop.permute.xlu0 %2360 }
0x1d71   :  { %v2151_v56 = vmax.f32 %v2149_v9, %v2150_v24  ;;  %v2156_v28 = vrot.slane %v2155_v25, 1  ;;  %2767 = vmatprep.mubr.msk.f32.mxu1 %vm42_vm1, %v2361_v27 }
0x1d73   :  { %v2158_v29 = vsub.f32 %v2142_v1, %v2151_v56  ;;  %v2157_v8 = vmax.f32 %v2155_v25, %v2156_v28  ;;  %v33_v25 = vld [vmem:[%s3592_s3 + $0x80] sm:$0xff] }
0x1d75   :  { %v2160_v5 = vmul.f32 1.442695, %v2158_v29  ;;  %v2159_v19 = vsub.f32 %v2145_v7, %v2157_v8  ;;  %v2327_v8 = vcombine.low %v3500_v43, %v3500_v43 }
0x1d77   :  { %2994 = vpow2.f32 %v2160_v5  ;;  %v2162_v14 = vmul.f32 1.442695, %v2159_v19 }
0x1d79   :  { %2996 = vpow2.f32 %v2162_v14 }
0x1d81   :  { %v2995_v11 = vpop.eup %2994 }
0x1d82   :  { %v2164_v36 = vrot.slane %v2995_v11, 4 }
0x1d83   :  { %v2997_v63 = vpop.eup %2996 }
0x1d84   :  { %v2165_v39 = vadd.f32 %v2995_v11, %v2164_v36  ;;  %v2170_v42 = vrot.slane %v2997_v63, 4  ;;  %v2334_v36 = vrot.slane %v2327_v8, %v3181_v3 }
0x1d86   :  { %v2166_v41 = vrot.slane %v2165_v39, 2  ;;  %v2171_v44 = vadd.f32 %v2997_v63, %v2170_v42  ;;  %v2352_v42 = vsel %vm2346_vm4, %v3452_v38, %v2334_v36 }
0x1d88   :  { %v2167_v45 = vadd.f32 %v2166_v41, %v2165_v39  ;;  %v2172_v26 = vrot.slane %v2171_v44, 2 }
0x1d8a   :  { %v2173_v10 = vadd.f32 %v2172_v26, %v2171_v44  ;;  %v2168_v13 = vrot.slane %v2167_v45, 1 }
0x1d8c   :  { %v2169_v18 = vadd.f32 %v2168_v13, %v2167_v45  ;;  %v2174_v47 = vrot.slane %v2173_v10, 1  ;;  %v2356_v45 = vsub.s32 3, %v3131_v23 }
0x1d8e   :  { %v2175_v49 = vadd.f32 %v2174_v47, %v2173_v10  ;;  %2998 = vrcp.f32 %v2169_v18 }
0x1d90   :  { %3000 = vrcp.f32 %v2175_v49 }
0x1d98   :  { %v2999_v50 = vpop.eup %2998 }
0x1d99   :  { %v2178_v52 = vmul.f32 %v2999_v50, %v2995_v11 }
0x1d9a   :  { %v3001_v53 = vpop.eup %3000 }
0x1d9b   :  { %v2179_v54 = vmul.f32 %v3001_v53, %v2997_v63  ;;  %v2180_v57 = vmul.f32 %v3374_v40, %v2178_v52 }
0x1d9d   :  { %v2181_v58 = vmul.f32 %v3430_v32, %v2179_v54  ;;  %v2182_v20 = vsel %vm42_vm1, %v2180_v57, 0.0  ;;  %v231_v32 = vcombine.high %v3140_v30, %v3140_v30  ;;  %v31_v30 = vld [vmem:[%s3592_s3 + $0x70] sm:$0xff] }
0x1d9e   :  { %v2183_v34 = vrot.slane %v2182_v20, 4 }
0x1d9f   :  { %v2189_v33 = vsel %vm42_vm1, %v2181_v58, 0.0  ;;  %v245_v0 = vrot.slane %v231_v32, %v3181_v3 }
0x1da0   :  { %v2184_v59 = vadd.f32 %v2183_v34, %v2182_v20  ;;  %v2190_v37 = vrot.slane %v2189_v33, 4 }
0x1da2   :  { %v2185_v48 = vrot.slane %v2184_v59, 2  ;;  %v2191_v21 = vadd.f32 %v2190_v37, %v2189_v33 }
0x1da4   :  { %v2186_v51 = vadd.f32 %v2185_v48, %v2184_v59  ;;  %v2192_v31 = vrot.slane %v2191_v21, 2 }
0x1da6   :  { %v2187_v60 = vrot.slane %v2186_v51, 1  ;;  %v2193_v55 = vadd.f32 %v2192_v31, %v2191_v21 }
0x1da8   :  { %v2194_v62 = vrot.slane %v2193_v55, 1  ;;  %v2188_v2 = vadd.f32 %v2187_v60, %v2186_v51 }
0x1daa   :  { %v2195_v61 = vadd.f32 %v2194_v62, %v2193_v55 }
0x1dac   :  { %v2198_v40 = vsel %vm433_vm3, %v2195_v61, %v2188_v2 }
0x1dad   :  { %2757 = vmatmul.mubr.msk.f32.vlgmr.msra.gmra.mrb[14].mxu0 %vm42_vm1, %v2198_v40 }
0x1e80   :  { %v2267_v22 = vpop.f32.mrb[14].mxu0 }
0x1e81   :  { %v2271_v1 = vadd.f32 %v2267_v22, %v245_v0  ;;  %v2758_v4 = vpop.f32.mrb[15].mxu0 }
0x1e83   :  { %v2272_v7 = vadd.f32 %v2271_v1, %v3506_v46  ;;  %v32_v46 = vld [vmem:[%s3592_s3 + $0x78] sm:$0xff] }
0x1e84   :  { %v2866_v27 = vpack.c.bf16 %v32_v46, %v31_v30 }
0x1e85   :  { %v2498_v6 = vmul.f32 -1.442695, %v2272_v7 }
0x1e86   :  { %2867 = vmatprep.subr.bf16.mxu1 %v2866_v27 }
0x1e87   :  { %3002 = vpow2.f32 %v2498_v6  ;;  %2869 = vmatpush3.bf16.msra.mxu1 %v2866_v27 }
0x1e91   :  { %v3003_v12 = vpop.eup %3002 }
0x1e92   :  { %v2276_v15 = vadd.f32 1.0, %v3003_v12 }
0x1e94   :  { %3004 = vrcp.f32 %v2276_v15 }
0x1e9e   :  { %v3005_v35 = vpop.eup %3004 }
0x1e9f   :  { %v2291_v9 = vmul.f32 %v3005_v35, %v3538_v16  ;;  %v34_v16 = vld [vmem:[%s3592_s3 + $0x88] sm:$0xff]  ;;  %v2298_v29 = vsub.f32 1.0, %v3005_v35  ;;  %v2304_v19 = vmul.f32 %v3005_v35, %v3500_v43  ;;  %v3018_v43 = vld [vmem:[%s3592_s3 + $0x90] sm:$0xff] }
0x1ea0   :  { %v2870_v56 = vpack.c.bf16 %v34_v16, %v33_v25  ;;  %v2357_v26 = vrot.slane %v3018_v43, %v2356_v45 }
0x1ea1   :  { %2293 = vrot.lane.b32.xlu1 %v2291_v9, %s3024_s20 }
0x1ea2   :  { %2871 = vmatprep.subr.bf16.mxu1 %v2870_v56 }
0x1ea3   :  { %2873 = vmatpush3.bf16.msra.mxu1 %v2870_v56 }
0x1f13   :  { %v2294_v17 = vpop.permute.xlu1 %2293 }
0x1f14   :  { %v2296_v24 = vadd.f32 %v2294_v17, %v2271_v1 }
0x1f16   :  { %3006 = vtanh.f32 %v2296_v24 }
0x1f20   :  { %v3007_v28 = vpop.eup %3006 }
0x1f21   :  { %2300 = vrot.lane.b32.xlu1 %v3007_v28, %s3026_s29 }
0x1f93   :  { %v2301_v5 = vpop.permute.xlu1 %2300 }
0x1f94   :  { %v2303_v14 = vmul.f32 %v2301_v5, %v2298_v29 }
0x1f96   :  { %v2305_v11 = vadd.f32 %v2304_v19, %v2303_v14 }
0x1f98   :  { %v2343_v63 = vrot.slane %v2305_v11, %v3181_v3 }
0x1f9a   :  { %v2344_v39 = vcombine.low %v2343_v63, %v2343_v63 }
0x1f9c   :  { %v2353_v41 = vsel %vm2348_vm5, %v2352_v42, %v2344_v39 }
0x1f9d   :  { %2362 = vrot.lane.b32.xlu1 %v2353_v41, %s3026_s29 }
0x200f   :  { %v2363_v44 = vpop.permute.xlu1 %2362 }
0x2010   :  { %2768 = vmatmul.mubr.msk.f32.vlgmr.msra.gmra.mrb[16].mxu1 %vm42_vm1, %v2363_v44 }
0x20e3   :  { %v2769_v10 = vpop.f32.mrb[16].mxu1 }
0x20e4   :  { %v2440_v3 = vadd.f32 %v2769_v10, %v2357_v26  ;;  %v2434_v13 = vpop.f32.mrb[17].mxu1 }
0x20e5   :  { %v2435_v18 = vadd.f32 %v2434_v13, %v2357_v26 }
0x20e6   :  { %v2447_v38 = vsel %vm2446_vm7, %v2440_v3, -inf }
0x20e7   :  { %2448 = vmax.xlane.f32.xlu1 %v2447_v38  ;;  %v2443_v47 = vsel %vm42_vm1, %v2435_v18, -inf }
0x20e8   :  { %2444 = vmax.xlane.f32.xlu0 %v2443_v47 }
0x2174   :  { %v2449_v49 = vpop.xlane.xlu1 %2448 }
0x2175   :  { %v2451_v50 = vsub.f32 %v2440_v3, %v2449_v49  ;;  %v2445_v52 = vpop.xlane.xlu0 %2444 }
0x2176   :  { %v2450_v23 = vsub.f32 %v2435_v18, %v2445_v52 }
0x2177   :  { %v2454_v53 = vmul.f32 1.442695, %v2451_v50 }
0x2178   :  { %v2452_v54 = vmul.f32 1.442695, %v2450_v23 }
0x217a   :  { %3008 = vpow2.f32 %v2452_v54 }
0x217b   :  { %3010 = vpow2.f32 %v2454_v53 }
0x2184   :  { %v3009_v57 = vpop.eup %3008 }
0x2185   :  { %v2456_v58 = vsel %vm42_vm1, %v3009_v57, 0.0  ;;  %v3011_v20 = vpop.eup %3010 }
0x2186   :  { %2457 = vadd.xlane.f32.xlu0 %v2456_v58  ;;  %v2459_v34 = vsel %vm2446_vm7, %v3011_v20, 0.0 }
0x218a   :  { %2460 = vadd.xlane.f32.xlu0 %v2459_v34 }
0x2213   :  { %v2458_v33 = vpop.xlane.xlu0 %2457 }
0x2214   :  { %3012 = vlog2.f32 %v2458_v33 }
0x2217   :  { %v2461_v59 = vpop.xlane.xlu0 %2460 }
0x2218   :  { %3014 = vlog2.f32 %v2461_v59 }
0x221e   :  { %v3013_v37 = vpop.eup %3012 }
0x221f   :  { %v2463_v48 = vmul.f32 0.6931472, %v3013_v37 }
0x2221   :  { %v2466_v21 = vsub.f32 %v2450_v23, %v2463_v48 }
0x2222   :  { %v3015_v51 = vpop.eup %3014 }
0x2223   :  { %2468 = vst.msk [vmem:[%s3596_s4] sm:$0xff] %vm42_vm1, %v2466_v21  ;;  %v2465_v31 = vmul.f32 0.6931472, %v3015_v51 }
0x2225   :  { %v2467_v60 = vsub.f32 %v2451_v50, %v2465_v31 }
0x2227   :  { %2469 = vst.msk [vmem:[%s3596_s4 + $0x8] sm:$0x3f] %vm2446_vm7, %v2467_v60 }

</bundles_post_ra>
